<compile_context>
chip_gen: v7x
topology: tpu7x:2x2x1
jax: 0.10.0
libtpu: 0.0.40
codegen_flags: <defaults>
</compile_context>

<pallas_src>
import functools

import numpy as np
import jax
import jax.numpy as jnp
from jax import lax
from jax.experimental import pallas as pl
from jax.experimental.pallas import tpu as pltpu


def _round_up(x, m):
    return (x + m - 1) // m * m


def _upconv_kernel(a_ref, w_ref, b_ref, o_ref, stack_ref, *, Kq, Wp, E):
    """One (batch, spatial-tile) grid step.

    a_ref     : (1, L_pad, C_pad)        bf16  whole padded image, NHWC-flat
                                               (spatial-major, channel-minor).
    w_ref     : (Kq*Kq*C_pad, S2*C_out)  bf16  phase-folded conv weights.
    b_ref     : (1, S2*C_out)            f32   bias replicated per phase.
    o_ref     : (1, m_tile, S2*C_out)    f32   output tile (rows = flattened
                                               original-grid positions, row
                                               stride Wp).
    stack_ref : (m_tile, Kq*Kq*C_pad)    bf16  VMEM im2col stack.
    """
    C_pad = a_ref.shape[2]
    m_tile = o_ref.shape[1]

    # m_tile is a multiple of 16 -> the dynamic slice start is packing-aligned.
    m0 = pl.multiple_of(pl.program_id(1) * m_tile, 16)
    # One aligned dynamic-offset load of this tile's input window; every tap
    # shift below is a static slice of this value (no dynamic unaligned loads).
    win = a_ref[0, pl.ds(m0, m_tile + E), :]            # (m_tile+E, C_pad) bf16

    # im2col in VMEM: Kq*Kq shifted views become columns of the MXU operand.
    for t in range(Kq * Kq):
        ty, tx = divmod(t, Kq)
        d = ty * Wp + tx                                # static flat tap offset
        stack_ref[:, t * C_pad:(t + 1) * C_pad] = win[d:d + m_tile, :]

    # One deep matmul: all s^2 phases and all taps in a single contraction.
    acc = jnp.dot(stack_ref[...], w_ref[...],
                  preferred_element_type=jnp.float32)   # (m_tile, S2*C_out) f32
    acc = acc + b_ref[...]                              # f32 bias
    # LeakyReLU(0.1) in f32.
    o_ref[0] = jnp.where(acc >= 0, acc, 0.1 * acc).astype(o_ref.dtype)


def upconv_pallas(x, weight, bias, *, scale, kernel_size, m_tile=512):
    """x: (B, C_in, H, W) f32, weight: (C_out, C_in, k, k), bias: (C_out,)."""
    B, C_in, H, W = x.shape
    C_out = weight.shape[0]
    k = int(kernel_size)
    s = int(scale)
    assert s == scale and s >= 1, "nearest upsample expects an integer scale"
    assert k % 2 == 1, "phase-decomposed kernel assumes odd kernel_size"
    p = (k - 1) // 2

    # ---- sub-pixel geometry on the ORIGINAL grid --------------------------
    # For output phase r and conv tap d, the source row offset (original grid)
    # is floor((r + d - p) / s).  Kq is the union tap extent shared by phases.
    q_all = [(r + d - p) // s for r in range(s) for d in range(k)]
    q_lo, q_hi = min(q_all), max(q_all)
    Kq = q_hi - q_lo + 1
    pad_lo, pad_hi = -q_lo, q_hi

    C_pad = _round_up(C_in, 16)                 # bf16 sublane-packing alignment
    S2 = s * s

    Hp, Wp = H + pad_lo + pad_hi, W + pad_lo + pad_hi
    M_total = H * Wp                            # flattened outputs (stride Wp)
    m_tile = min(_round_up(m_tile, 16), _round_up(M_total, 16))
    n_mt = pl.cdiv(M_total, m_tile)
    M_pad = n_mt * m_tile
    d_max = (Kq - 1) * Wp + (Kq - 1)            # largest static tap offset
    E = _round_up(d_max, 16)                    # halo rows in the input window
    L_pad = _round_up(max(Hp * Wp, M_pad + E), 16)

    # ---- phase-folded weights / bias (trace-time prep) --------------------
    sel = np.zeros((s, s, Kq, Kq, k, k), np.float32)
    for ry in range(s):
        for rx in range(s):
            for dy in range(k):
                ty = (ry + dy - p) // s - q_lo
                for dx in range(k):
                    tx = (rx + dx - p) // s - q_lo
                    sel[ry, rx, ty, tx, dy, dx] = 1.0
    w_eff = jnp.einsum("pqtuyx,ocyx->tucpqo", jnp.asarray(sel),
                       weight.astype(jnp.float32))     # (Kq,Kq,C_in,s,s,C_out)
    w_eff = jnp.pad(w_eff, ((0, 0), (0, 0), (0, C_pad - C_in),
                            (0, 0), (0, 0), (0, 0)))
    w_all = w_eff.reshape(Kq * Kq * C_pad, S2 * C_out).astype(jnp.bfloat16)
    b_all = jnp.tile(bias.astype(jnp.float32), S2).reshape(1, S2 * C_out)

    # ---- activation layout prep (pure data movement, bf16 at the HBM edge) -
    xt = jnp.transpose(x, (0, 2, 3, 1))                           # NHWC
    xt = jnp.pad(xt, ((0, 0), (pad_lo, pad_hi), (pad_lo, pad_hi),
                      (0, C_pad - C_in)))
    a = xt.astype(jnp.bfloat16).reshape(B, Hp * Wp, C_pad)
    a = jnp.pad(a, ((0, 0), (0, L_pad - Hp * Wp), (0, 0)))

    kernel = functools.partial(_upconv_kernel, Kq=Kq, Wp=Wp, E=E)
    out_flat = pl.pallas_call(
        kernel,
        out_shape=jax.ShapeDtypeStruct((B, M_pad, S2 * C_out), x.dtype),
        grid_spec=pltpu.PrefetchScalarGridSpec(
            num_scalar_prefetch=0,
            grid=(B, n_mt),
            in_specs=[
                pl.BlockSpec((1, L_pad, C_pad), lambda b, m: (b, 0, 0)),
                pl.BlockSpec((Kq * Kq * C_pad, S2 * C_out),
                             lambda b, m: (0, 0)),
                pl.BlockSpec((1, S2 * C_out), lambda b, m: (0, 0)),
            ],
            out_specs=pl.BlockSpec((1, m_tile, S2 * C_out),
                                   lambda b, m: (b, m, 0)),
            scratch_shapes=[pltpu.VMEM((m_tile, Kq * Kq * C_pad),
                                       jnp.bfloat16)],
        ),
        compiler_params=pltpu.CompilerParams(
            dimension_semantics=("parallel", "parallel")),
    )(a, w_all, b_all)

    # ---- un-flatten + phase interleave (layout only; drops junk columns) ---
    o = out_flat[:, :H * Wp, :].reshape(B, H, Wp, s, s, C_out)[:, :, :W]
    o = jnp.transpose(o, (0, 5, 1, 3, 2, 4))          # (B, C_out, H, ry, W, rx)
    return o.reshape(B, C_out, H * s, W * s)


def upconv_ref(x, weight, bias, *, scale, kernel_size):
    """Pure-JAX reference (matches the PyTorch module's forward)."""
    s = int(scale)
    k = int(kernel_size)
    pad = (k - 1) // 2
    x_up = jnp.repeat(jnp.repeat(x, s, axis=2), s, axis=3)
    y = lax.conv_general_dilated(
        x_up, weight, window_strides=(1, 1),
        padding=((pad, pad), (pad, pad)),
        dimension_numbers=("NCHW", "OIHW", "NCHW"))
    y = y + bias[None, :, None, None]
    return jnp.where(y >= 0, y, 0.1 * y)


if __name__ == "__main__":
    key = jax.random.PRNGKey(0)
    kx, kw, kb = jax.random.split(key, 3)

    B, C_in, C_out, H, W = 2, 4, 8, 16, 16
    kernel_size, scale = 3, 2

    x = jax.random.normal(kx, (B, C_in, H, W), dtype=jnp.float32)
    weight = 0.2 * jax.random.normal(
        kw, (C_out, C_in, kernel_size, kernel_size), dtype=jnp.float32)
    bias = 0.1 * jax.random.normal(kb, (C_out,), dtype=jnp.float32)

    out = upconv_pallas(x, weight, bias, scale=scale, kernel_size=kernel_size)
    out = jax.block_until_ready(out)
    assert out.shape == (B, C_out, H * scale, W * scale), out.shape

    ref = upconv_ref(x, weight, bias, scale=scale, kernel_size=kernel_size)
    err = float(jnp.max(jnp.abs(out - ref)))
    # bf16 MXU operands with f32 accumulation -> small numerical difference only
    assert err < 1e-1, f"max abs err vs reference: {err}"

    print("KERNEL_OK")
</pallas_src>

<mosaic_0001>
module attributes {stable_mosaic.version = 11 : i64} {
  func.func @_upconv_kernel(%arg0: i32, %arg1: i32, %arg2: memref<1x336x16xbf16, #tpu.memory_space<vmem>>, %arg3: memref<144x32xbf16, #tpu.memory_space<vmem>>, %arg4: memref<1x32xf32, #tpu.memory_space<vmem>>, %arg5: memref<1x288x32xf32, #tpu.memory_space<vmem>>, %arg6: memref<288x144xbf16, #tpu.memory_space<vmem>>) attributes {dimension_semantics = [#tpu.dimension_semantics<parallel>, #tpu.dimension_semantics<parallel>], iteration_bounds = array<i64: 2, 1>, scalar_prefetch = 0 : i64, scratch_operands = 1 : i64, tpu.core_type = #tpu.core_type<tc>, window_params = [{transform_indices = @transform_0, window_bounds = array<i64: 1, 336, 16>}, {pipeline_mode = #tpu.pipeline_mode<synchronous>, transform_indices = @transform_1, window_bounds = array<i64: 144, 32>}, {pipeline_mode = #tpu.pipeline_mode<synchronous>, transform_indices = @transform_2, window_bounds = array<i64: 1, 32>}, {transform_indices = @transform_3, window_bounds = array<i64: 1, 288, 32>}]} {
    %c288_i32 = arith.constant 288 : i32
    %0 = arith.muli %arg1, %c288_i32 : i32
    %1 = tpu.assume_multiple %0, 16 : i32
    %c0 = arith.constant 0 : index
    %2 = arith.index_cast %1 : i32 to index
    %c0_0 = arith.constant 0 : index
    %3 = vector.load %arg2[%c0, %2, %c0_0] : memref<1x336x16xbf16, #tpu.memory_space<vmem>>, vector<1x336x16xbf16>
    %4 = vector.shape_cast %3 : vector<1x336x16xbf16> to vector<336x16xbf16>
    %5 = vector.extract_strided_slice %4 {offsets = [0, 0], sizes = [288, 16], strides = [1, 1]} : vector<336x16xbf16> to vector<288x16xbf16>
    %c0_1 = arith.constant 0 : index
    %c0_2 = arith.constant 0 : index
    %6 = vector.load %arg6[%c0_1, %c0_2] : memref<288x144xbf16, #tpu.memory_space<vmem>>, vector<288x16xbf16>
    tpu.vector_store %arg6[%c0_1, %c0_2], %5 {strides = array<i32>} : memref<288x144xbf16, #tpu.memory_space<vmem>>, vector<288x16xbf16>,
    %7 = vector.extract_strided_slice %4 {offsets = [1, 0], sizes = [288, 16], strides = [1, 1]} : vector<336x16xbf16> to vector<288x16xbf16>
    %c0_3 = arith.constant 0 : index
    %c16 = arith.constant 16 : index
    %8 = vector.load %arg6[%c0_3, %c16] : memref<288x144xbf16, #tpu.memory_space<vmem>>, vector<288x16xbf16>
    tpu.vector_store %arg6[%c0_3, %c16], %7 {strides = array<i32>} : memref<288x144xbf16, #tpu.memory_space<vmem>>, vector<288x16xbf16>,
    %9 = vector.extract_strided_slice %4 {offsets = [2, 0], sizes = [288, 16], strides = [1, 1]} : vector<336x16xbf16> to vector<288x16xbf16>
    %c0_4 = arith.constant 0 : index
    %c32 = arith.constant 32 : index
    %10 = vector.load %arg6[%c0_4, %c32] : memref<288x144xbf16, #tpu.memory_space<vmem>>, vector<288x16xbf16>
    tpu.vector_store %arg6[%c0_4, %c32], %9 {strides = array<i32>} : memref<288x144xbf16, #tpu.memory_space<vmem>>, vector<288x16xbf16>,
    %11 = vector.extract_strided_slice %4 {offsets = [18, 0], sizes = [288, 16], strides = [1, 1]} : vector<336x16xbf16> to vector<288x16xbf16>
    %c0_5 = arith.constant 0 : index
    %c48 = arith.constant 48 : index
    %12 = vector.load %arg6[%c0_5, %c48] : memref<288x144xbf16, #tpu.memory_space<vmem>>, vector<288x16xbf16>
    tpu.vector_store %arg6[%c0_5, %c48], %11 {strides = array<i32>} : memref<288x144xbf16, #tpu.memory_space<vmem>>, vector<288x16xbf16>,
    %13 = vector.extract_strided_slice %4 {offsets = [19, 0], sizes = [288, 16], strides = [1, 1]} : vector<336x16xbf16> to vector<288x16xbf16>
    %c0_6 = arith.constant 0 : index
    %c64 = arith.constant 64 : index
    %14 = vector.load %arg6[%c0_6, %c64] : memref<288x144xbf16, #tpu.memory_space<vmem>>, vector<288x16xbf16>
    tpu.vector_store %arg6[%c0_6, %c64], %13 {strides = array<i32>} : memref<288x144xbf16, #tpu.memory_space<vmem>>, vector<288x16xbf16>,
    %15 = vector.extract_strided_slice %4 {offsets = [20, 0], sizes = [288, 16], strides = [1, 1]} : vector<336x16xbf16> to vector<288x16xbf16>
    %c0_7 = arith.constant 0 : index
    %c80 = arith.constant 80 : index
    %16 = vector.load %arg6[%c0_7, %c80] : memref<288x144xbf16, #tpu.memory_space<vmem>>, vector<288x16xbf16>
    tpu.vector_store %arg6[%c0_7, %c80], %15 {strides = array<i32>} : memref<288x144xbf16, #tpu.memory_space<vmem>>, vector<288x16xbf16>,
    %17 = vector.extract_strided_slice %4 {offsets = [36, 0], sizes = [288, 16], strides = [1, 1]} : vector<336x16xbf16> to vector<288x16xbf16>
    %c0_8 = arith.constant 0 : index
    %c96 = arith.constant 96 : index
    %18 = vector.load %arg6[%c0_8, %c96] : memref<288x144xbf16, #tpu.memory_space<vmem>>, vector<288x16xbf16>
    tpu.vector_store %arg6[%c0_8, %c96], %17 {strides = array<i32>} : memref<288x144xbf16, #tpu.memory_space<vmem>>, vector<288x16xbf16>,
    %19 = vector.extract_strided_slice %4 {offsets = [37, 0], sizes = [288, 16], strides = [1, 1]} : vector<336x16xbf16> to vector<288x16xbf16>
    %c0_9 = arith.constant 0 : index
    %c112 = arith.constant 112 : index
    %20 = vector.load %arg6[%c0_9, %c112] : memref<288x144xbf16, #tpu.memory_space<vmem>>, vector<288x16xbf16>
    tpu.vector_store %arg6[%c0_9, %c112], %19 {strides = array<i32>} : memref<288x144xbf16, #tpu.memory_space<vmem>>, vector<288x16xbf16>,
    %21 = vector.extract_strided_slice %4 {offsets = [38, 0], sizes = [288, 16], strides = [1, 1]} : vector<336x16xbf16> to vector<288x16xbf16>
    %c0_10 = arith.constant 0 : index
    %c128 = arith.constant 128 : index
    %22 = vector.load %arg6[%c0_10, %c128] : memref<288x144xbf16, #tpu.memory_space<vmem>>, vector<288x16xbf16>
    tpu.vector_store %arg6[%c0_10, %c128], %21 {strides = array<i32>} : memref<288x144xbf16, #tpu.memory_space<vmem>>, vector<288x16xbf16>,
    %c0_11 = arith.constant 0 : index
    %c0_12 = arith.constant 0 : index
    %23 = vector.load %arg6[%c0_11, %c0_12] : memref<288x144xbf16, #tpu.memory_space<vmem>>, vector<288x144xbf16>
    %c0_13 = arith.constant 0 : index
    %c0_14 = arith.constant 0 : index
    %24 = vector.load %arg3[%c0_13, %c0_14] : memref<144x32xbf16, #tpu.memory_space<vmem>>, vector<144x32xbf16>
    %cst = arith.constant dense<0.000000e+00> : vector<288x32xf32>
    %25 = tpu.matmul %23, %24, %cst {dimension_numbers = #tpu.dot_dimension_numbers<[1], [0], [0], [1], [0, 0, 1, 1], [], []>} : vector<288x144xbf16>, vector<144x32xbf16>, vector<288x32xf32> -> vector<288x32xf32>
    %c0_15 = arith.constant 0 : index
    %c0_16 = arith.constant 0 : index
    %26 = vector.load %arg4[%c0_15, %c0_16] : memref<1x32xf32, #tpu.memory_space<vmem>>, vector<1x32xf32>
    %27 = vector.broadcast %26 : vector<1x32xf32> to vector<288x32xf32>
    %28 = arith.addf %25, %27 : vector<288x32xf32>
    %cst_17 = arith.constant 0.000000e+00 : f32
    %29 = vector.broadcast %cst_17 : f32 to vector<288x32xf32>
    %30 = arith.cmpf oge, %28, %29 : vector<288x32xf32>
    %cst_18 = arith.constant 1.000000e-01 : f32
    %31 = vector.broadcast %cst_18 : f32 to vector<288x32xf32>
    %32 = arith.mulf %31, %28 : vector<288x32xf32>
    %33 = arith.select %30, %28, %32 : vector<288x32xi1>, vector<288x32xf32>
    %c0_19 = arith.constant 0 : index
    %c0_20 = arith.constant 0 : index
    %c0_21 = arith.constant 0 : index
    %34 = vector.load %arg5[%c0_19, %c0_20, %c0_21] : memref<1x288x32xf32, #tpu.memory_space<vmem>>, vector<1x288x32xf32>
    %35 = vector.shape_cast %34 : vector<1x288x32xf32> to vector<288x32xf32>
    %36 = vector.shape_cast %33 : vector<288x32xf32> to vector<1x288x32xf32>
    tpu.vector_store %arg5[%c0_19, %c0_20, %c0_21], %36 {strides = array<i32>} : memref<1x288x32xf32, #tpu.memory_space<vmem>>, vector<1x288x32xf32>,
    return
  }
  func.func @transform_0(%arg0: i32, %arg1: i32) -> (i32, i32, i32) {
    %c0_i32 = arith.constant 0 : i32
    %c0_i32_0 = arith.constant 0 : i32
    %c0_i32_1 = arith.constant 0 : i32
    return %arg0, %c0_i32, %c0_i32_0 : i32, i32, i32
  }
  func.func @transform_1(%arg0: i32, %arg1: i32) -> (i32, i32) {
    %c0_i32 = arith.constant 0 : i32
    %c0_i32_0 = arith.constant 0 : i32
    %c0_i32_1 = arith.constant 0 : i32
    return %c0_i32, %c0_i32_0 : i32, i32
  }
  func.func @transform_2(%arg0: i32, %arg1: i32) -> (i32, i32) {
    %c0_i32 = arith.constant 0 : i32
    %c0_i32_0 = arith.constant 0 : i32
    %c0_i32_1 = arith.constant 0 : i32
    return %c0_i32, %c0_i32_0 : i32, i32
  }
  func.func @transform_3(%arg0: i32, %arg1: i32) -> (i32, i32, i32) {
    %c0_i32 = arith.constant 0 : i32
    %c0_i32_0 = arith.constant 0 : i32
    return %arg0, %arg1, %c0_i32 : i32, i32, i32
  }
}

</mosaic_0001>

<bundles_post_ra>
// kernel: tpu_custom_call.1
= control target key start
LH: loop header
LB: loop body
LE: loop exit
PB: predicated region body
PF: predicated region fallthrough
CT: control target
= control target key end

     0   :  { %s2141_s12 = smov 0   ;;  %s2143_s13 = smov 0   ;;  %s3640_s0 = inlined_call_operand.vmem [shape: bf16[2,336,16], index: 0, kind: input, shape index: {}]   ;;  %s3641_s1 = inlined_call_operand.vmem [shape: bf16[144,32], index: 1, kind: input, shape index: {}]   ;;  %s3642_s2 = inlined_call_operand.vmem [shape: f32[1,32], index: 2, kind: input, shape index: {}]   ;;  %s3643_s3 = inlined_call_operand.vmem [shape: f32[2,288,32], index: 3, kind: output, shape index: {}]  }
   0x1   :  { %s2145_s14 = smov 0  }
   0x2 LB: > { %s25_s15 = sadd.s32 1, %s2107_s13  ;;  %p1951_p0 = scmp.ge.s32.totalorder %s2111_s14, 1  ;;  %s2111_s14 = sphi %s2145_s14, %s13_s14   ;;  %s2107_s13 = sphi %s2143_s13, %s3730_s13   ;;  %s2103_s12 = sphi %s2141_s12, %s3729_s12  }
   0x3   : > { %p27_p1 = scmp.ge.s32.totalorder %s25_s15, 2  ;;  %p151_p2 = scmp.lt.s32.totalorder %s2111_s14, 3 }
   0x5   : > { %s3732_s15 = smov (%p27_p1, %s25_s15), 0  ;;  %p152_p3 = pnand %p1951_p0, %p151_p2 }
   0x7   : > { %155 = sbr.rel (%p152_p3) target bundleno = 619 (0x26b), region = 32 }
   0xe   : > { %p179_p4 = scmp.lt.s32.totalorder %s2103_s12, 1  ;;  %vm593_vm0 = vcmask 1046528   ;;  %v2113_v0 = vmov 0   ;;  %v2073_v1 = vld [vmem:[%s3641_s1] sm:$0xff]   ;;  %vm946_vm1 = vcmask 1045504   ;;  %v2074_v2 = vld [vmem:[%s3641_s1 + $0x8] sm:$0xff]  }
   0xf   : > { %1542 = vmatprep.subr.bf16.mxu0 %v2113_v0  ;;  %2007 = vmatprep.subr.bf16.mxu1 %v2113_v0  ;;  %v2075_v3 = vld [vmem:[%s3641_s1 + $0x10] sm:$0xff]   ;;  %vm371_vm2 = vsmask.f32 7424  ;;  %vm349_vm3 = vcmask 130048   ;;  %s2114_s26 = smov 48   ;;  %s2115_s27 = smov 32  }
  0x10   : > { %s3734_s12 = smov (!%p179_p4, %s2103_s12), 1  ;;  %1543 = vmatpush1.bf16.msra.mxu0 %v2073_v1  ;;  %2016 = vmatpush1.bf16.msra.mxu1 %v2073_v1  ;;  %vm787_vm4 = vsmask.f32 6400  ;;  %s2116_s28 = smov 80   ;;  %vm1140_vm5 = vsmask.f32 5376 }
  0x11   : > { %s2025_s18 = smul.u32 168, %s3734_s12  ;;  %1544 = vmatprep.subr.bf16.mxu0 %v2113_v0  ;;  %2008 = vmatprep.subr.bf16.mxu1 %v2113_v0  ;;  %s2117_s29 = smov 16   ;;  %vm1299_vm6 = vcmask 1044480   ;;  %vm574_vm7 = vcmask 261248   ;;  %vm685_vm8 = vcmask 392448   ;;  %vm768_vm9 = vcmask 523648  }
  0x12   : > { %s2118_s7 = smov 64   ;;  %s2119_s10 = smov 96   ;;  %vm927_vm10 = vcmask 654848   ;;  %vm1038_vm11 = vcmask 786048   ;;  %vm1121_vm12 = vcmask 917248   ;;  %vm1280_vm13 = vcmask 1048448  }
  0x13   : > { %s2173_s23 = scalar_lea.vmem %s3640_s0, %s2025_s18  ;;  %s2120_s17 = smov 112   ;;  %vm1827_vm14 = vcmask 261120  }
  0x14   : > { %v2181_v4 = vld [vmem:[%s2173_s23 + $0x8] sm:$0xff]   ;;  %v2184_v5 = vld [vmem:[%s2173_s23 + $0x10] sm:$0xff]   ;;  %v2061_v6 = vld [vmem:[%s2173_s23] sm:$0xff]   ;;  %1545 = vmatpush1.bf16.msra.mxu0 %v2074_v2  ;;  %2017 = vmatpush1.bf16.msra.mxu1 %v2074_v2  ;;  %s2026_s24 = smul.u32 288, %s3734_s12 }
  0x15   : > { %v595_v7 = vrot.slane %v2181_v4, 1  ;;  %v597_v8 = vrot.slane %v2184_v5, 1  ;;  %v947_v9 = vrot.slane %v2181_v4, 2  ;;  %v948_v10 = vrot.slane %v2184_v5, 2  ;;  %1546 = vmatprep.subr.bf16.mxu0 %v2113_v0  ;;  %2009 = vmatprep.subr.bf16.mxu1 %v2113_v0  ;;  %351 = vst.msk [vmem:[#allocation2 + $0x10] sm:$0xff] %vm349_vm3, %v2181_v4  ;;  %352 = vst.msk [vmem:[#allocation2 + $0x20] sm:$0xff] %vm349_vm3, %v2184_v5 }
  0x16   : > { %v594_v11 = vrot.slane %v2061_v6, 1  ;;  %v2198_v12 = vld [vmem:[%s2173_s23 + $0x48] sm:$0xff]   ;;  %350 = vst.msk [vmem:[#allocation2] sm:$0xff] %vm349_vm3, %v2061_v6  ;;  %v2210_v15 = vld [vmem:[%s2173_s23 + $0x50] sm:$0xff]   ;;  %v373_v16 = vshrl.u32 %v2061_v6, 16  ;;  %v2217_v19 = vld [vmem:[%s2173_s23 + $0x58] sm:$0xff]  }
  0x17   : > { %v2204_v13 = vsel %vm593_vm0, %v595_v7, %v597_v8  ;;  %v949_v14 = vsel %vm946_vm1, %v947_v9, %v948_v10  ;;  %v3647_v18 = vrot.slane %v2198_v12, 1  ;;  %3679 = vst [vmem:[#allocation3_spill] sm:$0xff] %v2217_v19  ;;  %v375_v20 = vshll.u32 %v2061_v6, 16  ;;  %359 = vst.msk [vmem:[#allocation2 + $0x90] sm:$0xff] %vm349_vm3, %v2198_v12  ;;  %v2254_v34 = vld [vmem:[%s2173_s23 + $0x60] sm:$0xff]   ;;  %v2266_v38 = vld [vmem:[%s2173_s23 + $0x18] sm:$0xff]  }
  0x18   : > { %714 = vrot.lane.b32.xlu0 %v2204_v13, %s2114_s26  ;;  %v596_v17 = vsel %vm593_vm0, %v594_v11, %v595_v7  ;;  %v380_v21 = vshll.u32 %v2181_v4, 16  ;;  %1547 = vmatpush1.bf16.msra.mxu0 %v2075_v3  ;;  %v613_v22 = vrot.slane %v2210_v15, 1  ;;  %v3646_v23 = vrot.slane %v2210_v15, 2  ;;  %360 = vst.msk [vmem:[#allocation2 + $0xa0] sm:$0xff] %vm349_vm3, %v2210_v15  ;;  %361 = vst.msk [vmem:[#allocation2 + $0xb0] sm:$0xff] %vm349_vm3, %v2217_v19  ;;  %v2279_v43 = vld [vmem:[%s2173_s23 + $0x68] sm:$0xff]  }
  0x19   : > { %631 = vrot.lane.b32.xlu1 %v596_v17, %s2115_s27  ;;  %v2226_v24 = vshll.u32 %v2198_v12, 16  ;;  %v2229_v25 = vshrl.u32 %v2198_v12, 16  ;;  %2018 = vmatpush1.bf16.msra.mxu1 %v2075_v3  ;;  %v615_v26 = vrot.slane %v2217_v19, 1  ;;  %v377_v27 = vrot.slane %v375_v20, 1  ;;  %362 = vst.msk [vmem:[#allocation2 + $0xc0] sm:$0xff] %vm349_vm3, %v2254_v34  ;;  %v2289_v48 = vld [vmem:[%s2173_s23 + $0x20] sm:$0xff]  }
  0x1a   : > { %v2234_v28 = vrot.slane %v380_v21, 1  ;;  %v966_v29 = vrot.slane %v2217_v19, 2  ;;  %1548 = vmatprep.subr.bf16.mxu0 %v2113_v0  ;;  %2010 = vmatprep.subr.bf16.mxu1 %v2113_v0  ;;  %v2244_v30 = vsel %vm593_vm0, %v3647_v18, %v613_v22  ;;  %v2248_v32 = vshll.u32 %v2210_v15, 16  ;;  %353 = vst.msk [vmem:[#allocation2 + $0x30] sm:$0xff] %vm349_vm3, %v2266_v38  ;;  %v2301_v52 = vld [vmem:[%s2173_s23 + $0x70] sm:$0xff]   ;;  %363 = vst.msk [vmem:[#allocation2 + $0xd0] sm:$0xff] %vm349_vm3, %v2279_v43 }
  0x1b   : > { %3680 = vst [vmem:[#allocation4_spill] sm:$0xff] %v2244_v30  ;;  %v3645_v31 = vrot.slane %v2226_v24, 1  ;;  %v2251_v33 = vshrl.u32 %v2210_v15, 16  ;;  %v2260_v35 = vsel %vm593_vm0, %v613_v22, %v615_v26  ;;  %v378_v36 = vor.u32 %v377_v27, %v373_v16  ;;  %v2319_v57 = vld [vmem:[%s2173_s23 + $0x28] sm:$0xff]   ;;  %354 = vst.msk [vmem:[#allocation2 + $0x40] sm:$0xff] %vm349_vm3, %v2289_v48  ;;  %v2331_v62 = vld [vmem:[%s2173_s23 + $0x78] sm:$0xff]  }
  0x1c   : > { %984 = vrot.lane.b32.xlu0 %v949_v14, %s2116_s28  ;;  %v2263_v37 = vshll.u32 %v2217_v19, 16  ;;  %v454_v40 = vrot.slane %v2248_v32, 1  ;;  %v2275_v41 = vshrl.u32 %v2217_v19, 16  ;;  %v824_v45 = vrot.slane %v2248_v32, 2  ;;  %364 = vst.msk [vmem:[#allocation2 + $0xe0] sm:$0xff] %vm349_vm3, %v2301_v52  ;;  %355 = vst.msk [vmem:[#allocation2 + $0x50] sm:$0xff] %vm349_vm3, %v2319_v57 }
  0x1d   : > { %649 = vrot.lane.b32.xlu1 %v2244_v30, %s2115_s27  ;;  %v450_v39 = vor.u32 %v2229_v25, %v3645_v31  ;;  %v823_v42 = vrot.slane %v2251_v33, 1  ;;  %v383_v44 = vsel %vm371_vm2, %v378_v36, %v2234_v28  ;;  %v384_v47 = vshrl.u32 %v2181_v4, 16  ;;  %v2349_v9 = vld [vmem:[%s2173_s23 + $0x30] sm:$0xff]   ;;  %365 = vst.msk [vmem:[#allocation2 + $0xf0] sm:$0xff] %vm349_vm3, %v2331_v62  ;;  %v2076_v36 = vld [vmem:[%s3641_s1 + $0x18] sm:$0xff]  }
  0x1e   : > { %v828_v46 = vrot.slane %v2263_v37, 2  ;;  %v827_v49 = vrot.slane %v2275_v41, 1  ;;  %v2295_v50 = vshll.u32 %v2184_v5, 16  ;;  %v2298_v51 = vshrl.u32 %v2184_v5, 16  ;;  %356 = vst.msk [vmem:[#allocation2 + $0x60] sm:$0xff] %vm349_vm3, %v2349_v9  ;;  %1549 = vmatpush1.bf16.msra.mxu0 %v2076_v36  ;;  %2019 = vmatpush1.bf16.msra.mxu1 %v2076_v36  ;;  %v2081_v4 = vld [vmem:[%s3641_s1 + $0x30] sm:$0xff]  }
  0x1f   : > { %v2311_v53 = vsel %vm946_vm1, %v3646_v23, %v966_v29  ;;  %v455_v54 = vsel %vm371_vm2, %v450_v39, %v454_v40  ;;  %v788_v55 = vrot.slane %v384_v47, 1  ;;  %v789_v56 = vrot.slane %v380_v21, 2  ;;  %1550 = vmatprep.subr.bf16.mxu0 %v2113_v0  ;;  %2011 = vmatprep.subr.bf16.mxu1 %v2113_v0  ;;  %v2458_v36 = vld [vmem:[%s2173_s23 + $0x88] sm:$0xff]  }
  0x20   : > { %520 = vrot.lane.b32.xlu0 %v383_v44, %s2117_s29  ;;  %3681 = vst [vmem:[#allocation5_spill] sm:$0xff] %v2311_v53  ;;  %v2325_v58 = vor.u32 %v824_v45, %v823_v42  ;;  %v791_v59 = vrot.slane %v2298_v51, 1  ;;  %v792_v60 = vrot.slane %v2295_v50, 2  ;;  %v968_v61 = vrot.slane %v2254_v34, 2  ;;  %367 = vst.msk [vmem:[#allocation2 + $0x110] sm:$0xff] %vm349_vm3, %v2458_v36 }
  0x21   : > { %732 = vrot.lane.b32.xlu1 %v2260_v35, %s2114_s26  ;;  %v2335_v63 = vor.u32 %v828_v46, %v827_v49  ;;  %v790_v1 = vor.u32 %v789_v56, %v788_v55  ;;  %v2338_v2 = vshll.u32 %v2254_v34, 16  ;;  %v2341_v3 = vshrl.u32 %v2254_v34, 16  ;;  %v2077_v46 = vld [vmem:[%s3641_s1 + $0x20] sm:$0xff]  }
  0x22   : > { %3682 = vst [vmem:[#allocation6_spill] sm:$0xff] %v2325_v58  ;;  %v2345_v6 = vor.u32 %v792_v60, %v791_v59  ;;  %v950_v7 = vrot.slane %v2266_v38, 2  ;;  %v1176_v11 = vrot.slane %v2275_v41, 2  ;;  %v1177_v14 = vrot.slane %v2263_v37, 3  ;;  %v2384_v49 = vld [vmem:[%s2173_s23 + $0x80] sm:$0xff]   ;;  %1551 = vmatpush1.bf16.msra.mxu0 %v2077_v46  ;;  %2020 = vmatpush1.bf16.msra.mxu1 %v2077_v46 }
  0x23   : > { %v1180_v16 = vrot.slane %v2341_v3, 2  ;;  %v2358_v17 = vshll.u32 %v2266_v38, 16  ;;  %v2365_v21 = vshrl.u32 %v2266_v38, 16  ;;  %v1141_v22 = vrot.slane %v2298_v51, 2  ;;  %366 = vst.msk [vmem:[#allocation2 + $0x100] sm:$0xff] %vm349_vm3, %v2384_v49  ;;  %1552 = vmatprep.subr.bf16.mxu0 %v2113_v0  ;;  %2012 = vmatprep.subr.bf16.mxu1 %v2113_v0 }
  0x24   : > { %538 = vrot.lane.b32.xlu0 %v455_v54, %s2117_s29  ;;  %v794_v20 = vsel %vm787_vm4, %v790_v1, %v2345_v6  ;;  %v1142_v27 = vrot.slane %v2295_v50, 3  ;;  %v830_v39 = vsel %vm787_vm4, %v2325_v58, %v2335_v63  ;;  %v1181_v42 = vrot.slane %v2338_v2, 3  ;;  %v2389_v54 = vld [vmem:[%s2173_s23 + $0x38] sm:$0xff]  }
  0x25   : > { %1002 = vrot.lane.b32.xlu1 %v2311_v53, %s2116_s28  ;;  %v1145_v44 = vrot.slane %v2358_v17, 3  ;;  %v1144_v45 = vrot.slane %v2365_v21, 2  ;;  %v2397_v55 = vsel %vm946_vm1, %v948_v10, %v950_v7  ;;  %v2409_v60 = vsel %vm946_vm1, %v966_v29, %v968_v61  ;;  %357 = vst.msk [vmem:[#allocation2 + $0x70] sm:$0xff] %vm349_vm3, %v2389_v54 }
  0x26   : > { %v1143_v56 = vor.u32 %v1142_v27, %v1141_v22  ;;  %v2411_v1 = vor.u32 %v1177_v14, %v1176_v11  ;;  %v2413_v10 = vor.u32 %v1181_v42, %v1180_v16  ;;  %v386_v11 = vor.u32 %v384_v47, %v2234_v28  ;;  %v2082_v47 = vld [vmem:[%s3641_s1 + $0x38] sm:$0xff]  }
  0x27   : > { %v2399_v59 = vor.u32 %v1145_v44, %v1144_v45  ;;  %v390_v14 = vrot.slane %v2295_v50, 1  ;;  %v458_v22 = vor.u32 %v2251_v33, %v454_v40  ;;  %v462_v27 = vrot.slane %v2263_v37, 1 }
  0x28   : > { %873 = vrot.lane.b32.xlu0 %v794_v20, %s2118_s7  ;;  %3683 = vst [vmem:[#allocation7_spill] sm:$0xff] %v2411_v1  ;;  %v2078_v20 = vld [vmem:[%s3641_s1 + $0x28] sm:$0xff]   ;;  %v1183_v16 = vsel %vm1140_vm5, %v2411_v1, %v2413_v10  ;;  %v599_v42 = vrot.slane %v2266_v38, 1  ;;  %v795_v44 = vrot.slane %v2365_v21, 1  ;;  %v796_v45 = vrot.slane %v2358_v17, 2 }
  0x29   : > { %891 = vrot.lane.b32.xlu1 %v830_v39, %s2118_s7  ;;  %v1147_v29 = vsel %vm1140_vm5, %v1143_v56, %v2399_v59  ;;  %1553 = vmatpush1.bf16.msra.mxu0 %v2078_v20  ;;  %v391_v28 = vsel %vm371_vm2, %v386_v11, %v390_v14  ;;  %v463_v40 = vsel %vm371_vm2, %v458_v22, %v462_v27  ;;  %v2461_v39 = vld [vmem:[%s2173_s23 + $0x40] sm:$0xff]   ;;  %v617_v46 = vrot.slane %v2254_v34, 1 }
  0x2a   : > { %2021 = vmatpush1.bf16.msra.mxu1 %v2078_v20  ;;  %1554 = vmatprep.subr.bf16.mxu0 %v2113_v0  ;;  %v831_v56 = vrot.slane %v2341_v3, 1  ;;  %v832_v20 = vrot.slane %v2338_v2, 2  ;;  %358 = vst.msk [vmem:[#allocation2 + $0x80] sm:$0xff] %vm349_vm3, %v2461_v39  ;;  %v600_v11 = vsel %vm593_vm0, %v597_v8, %v599_v42  ;;  %v1301_v50 = vrot.slane %v2266_v38, 3 }
  0x2b   : > { %2013 = vmatprep.subr.bf16.mxu1 %v2113_v0  ;;  %v1319_v37 = vrot.slane %v2254_v34, 3  ;;  %v1321_v34 = vrot.slane %v2279_v43, 3  ;;  %v1303_v38 = vrot.slane %v2289_v48, 3  ;;  %v3685_v53 = vrot.slane %v2319_v57, 2 }
  0x2c   : > { %1067 = vrot.lane.b32.xlu0 %v2397_v55, %s2119_s10  ;;  %v2496_v22 = vor.u32 %v832_v20, %v831_v56 }
  0x2d   : > { %1085 = vrot.lane.b32.xlu1 %v2409_v60, %s2119_s10  ;;  %1555 = vmatpush1.bf16.msra.mxu0 %v2081_v4 }
  0x2e   : > { %2022 = vmatpush1.bf16.msra.mxu1 %v2081_v4  ;;  %1556 = vmatprep.subr.bf16.mxu0 %v2113_v0  ;;  %v2513_v4 = vshll.u32 %v2279_v43, 16 }
  0x2f   : > { %2014 = vmatprep.subr.bf16.mxu1 %v2113_v0 }
  0x30   : > { %1226 = vrot.lane.b32.xlu0 %v1147_v29, %s2120_s17  ;;  %v2083_v29 = vld [vmem:[%s3641_s1 + $0x40] sm:$0xff]  }
  0x31   : > { %1244 = vrot.lane.b32.xlu1 %v1183_v16, %s2120_s17  ;;  %1557 = vmatpush1.bf16.msra.mxu0 %v2082_v47  ;;  %v2488_v16 = vor.u32 %v796_v45, %v795_v44  ;;  %v3653_v44 = vrot.slane %v2279_v43, 2  ;;  %v1185_v45 = vrot.slane %v2513_v4, 3 }
  0x32   : > { %2023 = vmatpush1.bf16.msra.mxu1 %v2082_v47  ;;  %1558 = vmatprep.subr.bf16.mxu0 %v2113_v0 }
  0x33   : > { %2015 = vmatprep.subr.bf16.mxu1 %v2113_v0  ;;  %v798_v8 = vsel %vm787_vm4, %v2345_v6, %v2488_v16  ;;  %v2504_v0 = vshll.u32 %v2289_v48, 16  ;;  %v3652_v6 = vrot.slane %v2289_v48, 2 }
  0x34   : > { %522 = vrot.lane.b32.xlu0 %v391_v28, %s2117_s29  ;;  %v2516_v28 = vshrl.u32 %v2279_v43, 16 }
  0x35   : > { %540 = vrot.lane.b32.xlu1 %v463_v40, %s2117_s29  ;;  %1559 = vmatpush1.bf16.msra.mxu0 %v2083_v29  ;;  %v1149_v47 = vrot.slane %v2504_v0, 3  ;;  %v2535_v56 = vsel %vm946_vm1, %v950_v7, %v3652_v6 }
  0x36   : > { %2024 = vmatpush1.bf16.msra.mxu1 %v2083_v29  ;;  %v2544_v29 = vsel %vm946_vm1, %v968_v61, %v3653_v44 }
  0x38   : > { %633 = vrot.lane.b32.xlu0 %v2204_v13, %s2115_s27  ;;  %v618_v13 = vsel %vm593_vm0, %v615_v26, %v617_v46  ;;  %v834_v26 = vsel %vm787_vm4, %v2335_v63, %v2496_v22  ;;  %v1184_v63 = vrot.slane %v2516_v28, 2 }
  0x39   : > { %651 = vrot.lane.b32.xlu1 %v2260_v35, %s2115_s27  ;;  %v2507_v35 = vshrl.u32 %v2289_v48, 16 }
  0x3b   : > { %v1148_v40 = vrot.slane %v2507_v35, 2 }
  0x3c   : > { %716 = vrot.lane.b32.xlu0 %v600_v11, %s2114_s26 }
  0x3d   : > { %734 = vrot.lane.b32.xlu1 %v618_v13, %s2114_s26  ;;  %v2537_v20 = vor.u32 %v1149_v47, %v1148_v40  ;;  %v3651_v40 = vrot.slane %v2338_v2, 1  ;;  %v1300_v47 = vrot.slane %v2184_v5, 3 }
  0x3f   : > { %v1151_v7 = vsel %vm1140_vm5, %v2399_v59, %v2537_v20  ;;  %v1302_v5 = vsel %vm1299_vm6, %v1300_v47, %v1301_v50 }
  0x40   : > { %875 = vrot.lane.b32.xlu0 %v798_v8, %s2118_s7  ;;  %v3650_v8 = vrot.slane %v2358_v17, 1  ;;  %1355 = vst.msk [vmem:[#allocation2 + $0x8] sm:$0xff] %vm349_vm3, %v1302_v5 }
  0x41   : > { %893 = vrot.lane.b32.xlu1 %v834_v26, %s2118_s7  ;;  %v466_v26 = vor.u32 %v2275_v41, %v462_v27  ;;  %v3649_v27 = vrot.slane %v2289_v48, 1 }
  0x43   : > { %v471_v41 = vsel %vm371_vm2, %v466_v26, %v3651_v40  ;;  %v2606_v26 = vsel %vm593_vm0, %v599_v42, %v3649_v27  ;;  %v2624_v42 = vshrl.u32 %v2319_v57, 16 }
  0x44   : > { %986 = vrot.lane.b32.xlu0 %v2397_v55, %s2116_s28  ;;  %v2546_v55 = vor.u32 %v1185_v45, %v1184_v63  ;;  %v835_v63 = vrot.slane %v2516_v28, 1  ;;  %v836_v45 = vrot.slane %v2513_v4, 2 }
  0x45   : > { %1004 = vrot.lane.b32.xlu1 %v2409_v60, %s2116_s28  ;;  %v394_v60 = vor.u32 %v2298_v51, %v390_v14  ;;  %v3644_v51 = vrot.slane %v2217_v19, 3  ;;  %v3648_v14 = vrot.slane %v2279_v43, 1  ;;  %v1152_v23 = vrot.slane %v2624_v42, 2 }
  0x46   : > { %v1187_v61 = vsel %vm1140_vm5, %v2413_v10, %v2546_v55  ;;  %v2608_v47 = vor.u32 %v836_v45, %v835_v63  ;;  %v2629_v63 = vld [vmem:[%s2173_s23 + $0x90] sm:$0xf]  ;;  %v237_v45 = vld [vmem:[%s2173_s23 + $0x94] sm:$0xf]  ;;  %v3686_v19 = vrot.slane %v2289_v48, 2 }
  0x47   : > { %v399_v59 = vsel %vm371_vm2, %v394_v60, %v3650_v8  ;;  %v1320_v10 = vsel %vm1299_vm6, %v3644_v51, %v1319_v37  ;;  %v800_v60 = vrot.slane %v2504_v0, 2  ;;  %v2647_v51 = vshrl.u32 %v2458_v36, 16 }
  0x48   : > { %1069 = vrot.lane.b32.xlu0 %v2535_v56, %s2119_s10  ;;  %1364 = vst.msk [vmem:[#allocation2 + $0x98] sm:$0xff] %vm349_vm3, %v1320_v10  ;;  %v1322_v10 = vsel %vm1299_vm6, %v1319_v37, %v1321_v34  ;;  %v3661_v37 = vrot.slane %v2301_v52, 2 }
  0x49   : > { %1087 = vrot.lane.b32.xlu1 %v2544_v29, %s2119_s10  ;;  %1365 = vst.msk [vmem:[#allocation2 + $0xa8] sm:$0xff] %vm349_vm3, %v1322_v10  ;;  %v1200_v8 = vrot.slane %v2647_v51, 2 }
  0x4c   : > { %1228 = vrot.lane.b32.xlu0 %v1151_v7, %s2120_s17  ;;  %v799_v7 = vrot.slane %v2507_v35, 1 }
  0x4d   : > { %1246 = vrot.lane.b32.xlu1 %v1187_v61, %s2120_s17  ;;  %v2598_v61 = vsel %vm593_vm0, %v617_v46, %v3648_v14  ;;  %v2617_v46 = vshrl.u32 %v2301_v52, 16  ;;  %v3657_v14 = vrot.slane %v2458_v36, 2 }
  0x4f   : > { %v1392_v5 = vld [vmem:[#allocation2 + $0x98] sm:$0xff]  ;;  %v1188_v31 = vrot.slane %v2617_v46, 2 }
  0x50   : > { %524 = vrot.lane.b32.xlu0 %v399_v59, %s2117_s29  ;;  %v2614_v59 = vshll.u32 %v2301_v52, 16  ;;  %1996 = vmatprep.mubr.msk.bf16.mxu1 %vm349_vm3, %v1392_v5 }
  0x51   : > { %542 = vrot.lane.b32.xlu1 %v471_v41, %s2117_s29  ;;  %v1374_v41 = vld [vmem:[#allocation2 + $0x8] sm:$0xff] }
  0x52   : > { %1987 = vmatprep.mubr.msk.bf16.mxu0 %vm349_vm3, %v1374_v41  ;;  %v2644_v41 = vshll.u32 %v2458_v36, 16  ;;  %v1189_v10 = vrot.slane %v2614_v59, 3 }
  0x54   : > { %635 = vrot.lane.b32.xlu0 %v600_v11, %s2115_s27  ;;  %v2610_v11 = vor.u32 %v800_v60, %v799_v7  ;;  %v1304_v7 = vsel %vm1299_vm6, %v1301_v50, %v1303_v38  ;;  %v838_v50 = vsel %vm787_vm4, %v2496_v22, %v2608_v47  ;;  %v3659_v22 = vrot.slane %v2458_v36, 3 }
  0x55   : > { %653 = vrot.lane.b32.xlu1 %v618_v13, %s2115_s27  ;;  %v2620_v13 = vshll.u32 %v2319_v57, 16  ;;  %1356 = vst.msk [vmem:[#allocation2 + $0x18] sm:$0xff] %vm349_vm3, %v1304_v7  ;;  %v1201_v40 = vrot.slane %v2644_v41, 3 }
  0x56   : > { %v802_v60 = vsel %vm787_vm4, %v2488_v16, %v2610_v11  ;;  %v2656_v16 = vcombine.low %v2629_v63, %v237_v45 }
  0x57   : > { %v1153_v18 = vrot.slane %v2620_v13, 3  ;;  %v2709_v30 = vor.u32 %v1201_v40, %v1200_v8 }
  0x58   : > { %718 = vrot.lane.b32.xlu0 %v2606_v26, %s2114_s26  ;;  %v2664_v7 = vrot.slane %v2656_v16, 2  ;;  %v3660_v27 = vrot.slane %v2656_v16, 3  ;;  %v856_v45 = vshrl.u32 %v2656_v16, 16  ;;  %v859_v6 = vshll.u32 %v2656_v16, 16 }
  0x59   : > { %736 = vrot.lane.b32.xlu1 %v2598_v61, %s2114_s26 }
  0x5a   : > { %v1332_v5 = vsel %vm1299_vm6, %v3659_v22, %v3660_v27  ;;  %v1204_v44 = vrot.slane %v856_v45, 2  ;;  %v1205_v58 = vrot.slane %v859_v6, 3  ;;  %v2701_v22 = vor.u32 %v1189_v10, %v1188_v31 }
  0x5b   : > { %1370 = vst.msk [vmem:[#allocation2 + $0xf8] sm:$0xff] %vm349_vm3, %v1332_v5  ;;  %v2703_v27 = vor.u32 %v1153_v18, %v1152_v23  ;;  %v852_v31 = vrot.slane %v2644_v41, 2  ;;  %v861_v8 = vrot.slane %v859_v6, 2  ;;  %v3688_v10 = vrot.slane %v2358_v17, 1 }
  0x5c   : > { %877 = vrot.lane.b32.xlu0 %v802_v60, %s2118_s7  ;;  %v2677_v60 = vsel %vm946_vm1, %v3657_v14, %v2664_v7  ;;  %v2696_v14 = vsel %vm946_vm1, %v3686_v19, %v3685_v53  ;;  %v2712_v19 = vrot.slane %v2458_v36, 1  ;;  %v851_v53 = vrot.slane %v2647_v51, 1 }
  0x5d   : > { %895 = vrot.lane.b32.xlu1 %v838_v50, %s2118_s7  ;;  %v3684_v50 = vrot.slane %v2279_v43, 2  ;;  %v2715_v5 = vor.u32 %v1205_v58, %v1204_v44  ;;  %v858_v44 = vrot.slane %v856_v45, 1  ;;  %v1155_v40 = vsel %vm1140_vm5, %v2537_v20, %v2703_v27  ;;  %v239_v20 = vld [vmem:[%s2173_s23 + $0x9c] sm:$0xf] }
  0x5e   : > { %v3666_v45 = vrot.slane %v2504_v0, 1  ;;  %v1191_v6 = vsel %vm1140_vm5, %v2546_v55, %v2701_v22  ;;  %v3670_v55 = vrot.slane %v2301_v52, 1 }
  0x5f   : > { %v2689_v1 = vsel %vm946_vm1, %v3684_v50, %v3661_v37  ;;  %v3668_v50 = vrot.slane %v2301_v52, 3  ;;  %v3664_v37 = vrot.slane %v2319_v57, 3 }
  0x60   : > { %988 = vrot.lane.b32.xlu0 %v2535_v56, %s2116_s28  ;;  %v3663_v56 = vrot.slane %v2656_v16, 1 }
  0x61   : > { %1006 = vrot.lane.b32.xlu1 %v2544_v29, %s2116_s28  ;;  %v1324_v18 = vsel %vm1299_vm6, %v1321_v34, %v3668_v50  ;;  %v1306_v23 = vsel %vm1299_vm6, %v1303_v38, %v3664_v37  ;;  %v2728_v29 = vsel %vm1140_vm5, %v2709_v30, %v2715_v5  ;;  %v3687_v34 = vrot.slane %v2338_v2, 1 }
  0x62   : > { %1366 = vst.msk [vmem:[#allocation2 + $0xb8] sm:$0xff] %vm349_vm3, %v1324_v18  ;;  %1357 = vst.msk [vmem:[#allocation2 + $0x28] sm:$0xff] %vm349_vm3, %v1306_v23  ;;  %v2738_v58 = vsel %vm593_vm0, %v2712_v19, %v3663_v56  ;;  %v402_v18 = vor.u32 %v2365_v21, %v3688_v10  ;;  %v3665_v23 = vrot.slane %v2513_v4, 1  ;;  %v2756_v56 = vor.u32 %v852_v31, %v851_v53  ;;  %v238_v21 = vld [vmem:[%s2173_s23 + $0x98] sm:$0xf] }
  0x63   : > { %v474_v38 = vor.u32 %v2341_v3, %v3687_v34  ;;  %v2758_v37 = vor.u32 %v861_v8, %v858_v44  ;;  %v2777_v53 = vcombine.low %v238_v21, %v239_v20  ;;  %v3671_v31 = vrot.slane %v2319_v57, 1 }
  0x64   : > { %1071 = vrot.lane.b32.xlu0 %v2696_v14, %s2119_s10  ;;  %v407_v3 = vsel %vm371_vm2, %v402_v18, %v3666_v45  ;;  %v839_v44 = vrot.slane %v2617_v46, 1  ;;  %v803_v8 = vrot.slane %v2624_v42, 1  ;;  %v840_v34 = vrot.slane %v2614_v59, 2 }
  0x65   : > { %1089 = vrot.lane.b32.xlu1 %v2689_v1, %s2119_s10  ;;  %v2764_v2 = vsel %vm787_vm4, %v2756_v56, %v2758_v37  ;;  %v479_v17 = vsel %vm371_vm2, %v474_v38, %v3665_v23  ;;  %v3667_v38 = vrot.slane %v2777_v53, 2  ;;  %v1209_v10 = vshrl.u32 %v2777_v53, 16 }
  0x66   : > { %v1212_v18 = vshll.u32 %v2777_v53, 16  ;;  %v3689_v20 = vrot.slane %v2289_v48, 1 }
  0x68   : > { %1230 = vrot.lane.b32.xlu0 %v1155_v40, %s2120_s17  ;;  %v804_v40 = vrot.slane %v2620_v13, 2  ;;  %v2804_v23 = vsel %vm593_vm0, %v3689_v20, %v3671_v31  ;;  %v1214_v45 = vrot.slane %v1212_v18, 3  ;;  %v2828_v18 = vshrl.u32 %v2331_v62, 16 }
  0x69   : > { %1248 = vrot.lane.b32.xlu1 %v1191_v6, %s2120_s17  ;;  %v2794_v6 = vsel %vm946_vm1, %v2664_v7, %v3667_v38  ;;  %v3690_v38 = vrot.slane %v2279_v43, 1 }
  0x6b   : > { %v2813_v50 = vsel %vm593_vm0, %v3690_v38, %v3670_v55  ;;  %v3674_v38 = vrot.slane %v2331_v62, 3  ;;  %v3693_v55 = vrot.slane %v2301_v52, 3 }
  0x6c   : > { %526 = vrot.lane.b32.xlu0 %v407_v3, %s2117_s29  ;;  %v3669_v3 = vrot.slane %v2777_v53, 3 }
  0x6d   : > { %544 = vrot.lane.b32.xlu1 %v479_v17, %s2117_s29  ;;  %v1211_v17 = vrot.slane %v1209_v10, 2  ;;  %v2815_v10 = vor.u32 %v840_v34, %v839_v44  ;;  %v3672_v44 = vrot.slane %v2644_v41, 1  ;;  %v1326_v31 = vsel %vm1299_vm6, %v3693_v55, %v3674_v38 }
  0x6e   : > { %1367 = vst.msk [vmem:[#allocation2 + $0xc8] sm:$0xff] %vm349_vm3, %v1326_v31  ;;  %v3678_v55 = vrot.slane %v2349_v9, 2 }
  0x6f   : > { %v2831_v43 = vor.u32 %v1214_v45, %v1211_v17  ;;  %v2844_v45 = vshll.u32 %v2349_v9, 16  ;;  %v2847_v17 = vshrl.u32 %v2349_v9, 16 }
  0x70   : > { %637 = vrot.lane.b32.xlu0 %v2606_v26, %s2115_s27  ;;  %v2806_v26 = vor.u32 %v804_v40, %v803_v8  ;;  %v1972_v8 = vcombine.low %v2629_v63, %v2629_v63  ;;  %v2825_v40 = vshll.u32 %v2331_v62, 16  ;;  %v3673_v63 = vrot.slane %v2349_v9, 3 }
  0x71   : > { %655 = vrot.lane.b32.xlu1 %v2598_v61, %s2115_s27  ;;  %v3691_v61 = vrot.slane %v2656_v16, 3  ;;  %v1156_v31 = vrot.slane %v2847_v17, 2 }
  0x72   : > { %v516_v34 = vshll.u32 %v1972_v8, 16  ;;  %v806_v20 = vsel %vm787_vm4, %v2610_v11, %v2806_v26 }
  0x73   : > { %v1334_v48 = vsel %vm1299_vm6, %v3691_v61, %v3669_v3  ;;  %v2852_v61 = vsel %vm1140_vm5, %v2715_v5, %v2831_v43  ;;  %v514_v3 = vor.u32 %v2647_v51, %v3672_v44  ;;  %v3694_v5 = vrot.slane %v2319_v57, 3 }
  0x74   : > { %1371 = vst.msk [vmem:[#allocation2 + $0x108] sm:$0xff] %vm349_vm3, %v1334_v48  ;;  %720 = vrot.lane.b32.xlu0 %v2804_v23, %s2114_s26  ;;  %3692 = vst [vmem:[#allocation8_spill] sm:$0xff] %v2852_v61  ;;  %v842_v48 = vsel %vm787_vm4, %v2608_v47, %v2815_v10  ;;  %v518_v11 = vrot.slane %v516_v34, 1  ;;  %v3675_v51 = vrot.slane %v2331_v62, 2  ;;  %v1157_v34 = vrot.slane %v2844_v45, 3 }
  0x75   : > { %738 = vrot.lane.b32.xlu1 %v2813_v50, %s2114_s26  ;;  %v1308_v61 = vsel %vm1299_vm6, %v3694_v5, %v3673_v63  ;;  %v1192_v44 = vrot.slane %v2828_v18, 2  ;;  %v1193_v5 = vrot.slane %v2825_v40, 3 }
  0x76   : > { %v2873_v47 = vsel %vm371_vm2, %v514_v3, %v518_v11  ;;  %1358 = vst.msk [vmem:[#allocation2 + $0x38] sm:$0xff] %vm349_vm3, %v1308_v61  ;;  %v1974_v61 = vcombine.low %v238_v21, %v238_v21 }
  0x77   : > { %3695 = vst [vmem:[#allocation9_spill] sm:$0xff] %v2873_v47  ;;  %v2907_v21 = vor.u32 %v1193_v5, %v1192_v44  ;;  %v3677_v5 = vrot.slane %v2620_v13, 1 }
  0x78   : > { %879 = vrot.lane.b32.xlu0 %v806_v20, %s2118_s7  ;;  %v629_v20 = vrot.slane %v1972_v8, 1  ;;  %v3698_v8 = vrot.slane %v2319_v57, 2  ;;  %v712_v63 = vrot.slane %v1974_v61, 1  ;;  %v868_v38 = vshll.u32 %v1974_v61, 16 }
  0x79   : > { %897 = vrot.lane.b32.xlu1 %v842_v48, %s2118_s7  ;;  %v3697_v48 = vrot.slane %v2301_v52, 2 }
  0x7a   : > { %v2887_v3 = vsel %vm593_vm0, %v2712_v19, %v629_v20  ;;  %v2905_v20 = vor.u32 %v1157_v34, %v1156_v31  ;;  %v870_v47 = vrot.slane %v868_v38, 2  ;;  %v3700_v31 = vrot.slane %v2504_v0, 1 }
  0x7b   : > { %3696 = vst [vmem:[#allocation10_spill] sm:$0xff] %v2887_v3  ;;  %v2896_v11 = vsel %vm946_vm1, %v3697_v48, %v3675_v51  ;;  %v3699_v48 = vrot.slane %v2656_v16, 1  ;;  %v1195_v16 = vsel %vm1140_vm5, %v2701_v22, %v2907_v21  ;;  %v3701_v38 = vrot.slane %v2513_v4, 1 }
  0x7c   : > { %990 = vrot.lane.b32.xlu0 %v2696_v14, %s2116_s28  ;;  %v2903_v14 = vsel %vm946_vm1, %v3698_v8, %v3678_v55  ;;  %v1159_v44 = vsel %vm1140_vm5, %v2703_v27, %v2905_v20  ;;  %v410_v34 = vor.u32 %v2507_v35, %v3700_v31  ;;  %v3676_v8 = vrot.slane %v2614_v59, 1 }
  0x7d   : > { %1008 = vrot.lane.b32.xlu1 %v2689_v1, %s2116_s28  ;;  %v865_v1 = vshrl.u32 %v1974_v61, 16  ;;  %v2914_v51 = vsel %vm593_vm0, %v3699_v48, %v712_v63  ;;  %v482_v63 = vor.u32 %v2516_v28, %v3701_v38  ;;  %v982_v28 = vrot.slane %v1974_v61, 2 }
  0x7e   : > { %v415_v35 = vsel %vm371_vm2, %v410_v34, %v3677_v5  ;;  %v605_v27 = vrot.slane %v2349_v9, 1  ;;  %v807_v48 = vrot.slane %v2847_v17, 1 }
  0x7f   : > { %v867_v3 = vrot.slane %v865_v1, 1  ;;  %v487_v4 = vsel %vm371_vm2, %v482_v63, %v3676_v8  ;;  %v2948_v22 = vsel %vm946_vm1, %v2664_v7, %v982_v28  ;;  %v3702_v7 = vrot.slane %v2777_v53, 2 }
  0x80   : > { %1073 = vrot.lane.b32.xlu0 %v2903_v14, %s2119_s10  ;;  %v3703_v8 = vrot.slane %v2319_v57, 1 }
  0x81   : > { %1091 = vrot.lane.b32.xlu1 %v2896_v11, %s2119_s10  ;;  %v871_v1 = vor.u32 %v870_v47, %v867_v3  ;;  %v843_v47 = vrot.slane %v2828_v18, 1  ;;  %v844_v3 = vrot.slane %v2825_v40, 2 }
  0x82   : > { %v2971_v5 = vsel %vm593_vm0, %v3703_v8, %v605_v27  ;;  %v1327_v8 = vrot.slane %v2384_v49, 3 }
  0x83   : > { %v2935_v0 = vsel %vm787_vm4, %v2758_v37, %v871_v1  ;;  %v2088_v37 = vld [vmem:[%s2173_s23 + $0xa0] ss:$0 sps:$4 sm:$0xff]   ;;  %v2973_v55 = vor.u32 %v844_v3, %v843_v47 }
  0x84   : > { %1232 = vrot.lane.b32.xlu0 %v1159_v44, %s2120_s17  ;;  %v808_v44 = vrot.slane %v2844_v45, 2  ;;  %v1065_v34 = vrot.slane %v2088_v37, 2  ;;  %v1221_v38 = vshll.u32 %v2088_v37, 16 }
  0x85   : > { %1250 = vrot.lane.b32.xlu1 %v1195_v16, %s2120_s17  ;;  %v1218_v16 = vshrl.u32 %v2088_v37, 16  ;;  %v846_v47 = vsel %vm787_vm4, %v2815_v10, %v2973_v55  ;;  %v3707_v10 = vrot.slane %v2331_v62, 3 }
  0x86   : > { %v2962_v1 = vsel %vm946_vm1, %v3702_v7, %v1065_v34  ;;  %v1223_v28 = vrot.slane %v1221_v38, 3  ;;  %v3704_v34 = vrot.slane %v2331_v62, 1 }
  0x88   : > { %528 = vrot.lane.b32.xlu0 %v415_v35, %s2117_s29  ;;  %v1335_v35 = vrot.slane %v2088_v37, 3  ;;  %v3705_v37 = vrot.slane %v2301_v52, 1 }
  0x89   : > { %546 = vrot.lane.b32.xlu1 %v487_v4, %s2117_s29  ;;  %v1220_v4 = vrot.slane %v1218_v16, 2 }
  0x8a   : > { %v715_v61 = vpop.permute.xlu0 %714  ;;  %v2982_v16 = vsel %vm593_vm0, %v3705_v37, %v3704_v34 }
  0x8b   : > { %v632_v63 = vpop.permute.xlu1 %631  ;;  %v1224_v57 = vor.u32 %v1223_v28, %v1220_v4  ;;  %v3014_v4 = vshrl.u32 %v2384_v49, 16  ;;  %v1328_v28 = vsel %vm1299_vm6, %v3707_v10, %v1327_v8 }
  0x8c   : > { %639 = vrot.lane.b32.xlu0 %v2804_v23, %s2115_s27  ;;  %v2975_v23 = vor.u32 %v808_v44, %v807_v48  ;;  %v3005_v48 = vshll.u32 %v2389_v54, 16  ;;  %1368 = vst.msk [vmem:[#allocation2 + $0xd8] sm:$0xff] %vm349_vm3, %v1328_v28 }
  0x8d   : > { %657 = vrot.lane.b32.xlu1 %v2813_v50, %s2115_s27  ;;  %v3706_v50 = vrot.slane %v2777_v53, 3  ;;  %v2992_v52 = vsel %vm1140_vm5, %v2831_v43, %v1224_v57  ;;  %v1309_v53 = vrot.slane %v2389_v54, 3  ;;  %v3008_v43 = vshrl.u32 %v2389_v54, 16 }
  0x8e   : > { %v985_v31 = vpop.permute.xlu0 %984  ;;  %v810_v3 = vsel %vm787_vm4, %v2806_v26, %v2975_v23  ;;  %v3708_v26 = vrot.slane %v2349_v9, 3  ;;  %v1161_v57 = vrot.slane %v3005_v48, 3  ;;  %v1196_v28 = vrot.slane %v3014_v4, 2 }
  0x8f   : > { %v1336_v38 = vsel %vm1299_vm6, %v3706_v50, %v1335_v35  ;;  %v650_v7 = vpop.permute.xlu1 %649  ;;  %v3011_v35 = vshll.u32 %v2384_v49, 16  ;;  %v958_v50 = vrot.slane %v2389_v54, 2 }
  0x90   : > { %1372 = vst.msk [vmem:[#allocation2 + $0x118] sm:$0xff] %vm349_vm3, %v1336_v38  ;;  %722 = vrot.lane.b32.xlu0 %v2971_v5, %s2114_s26  ;;  %v1310_v34 = vsel %vm1299_vm6, %v3708_v26, %v1309_v53  ;;  %v1160_v38 = vrot.slane %v3008_v43, 2 }
  0x91   : > { %740 = vrot.lane.b32.xlu1 %v2982_v16, %s2114_s26  ;;  %1359 = vst.msk [vmem:[#allocation2 + $0x48] sm:$0xff] %vm349_vm3, %v1310_v34  ;;  %v1197_v26 = vrot.slane %v3011_v35, 3 }
  0x92   : > { %v521_v44 = vpop.permute.xlu0 %520 }
  0x93   : > { %v733_v37 = vpop.permute.xlu1 %732  ;;  %575 = vst.msk [vmem:[#allocation2] sm:$0xff] %vm574_vm7, %v521_v44  ;;  %v976_v44 = vrot.slane %v2384_v49, 2 }
  0x94   : > { %686 = vst.msk [vmem:[#allocation2] sm:$0xff] %vm685_vm8, %v632_v63  ;;  %881 = vrot.lane.b32.xlu0 %v810_v3, %s2118_s7  ;;  %v3053_v3 = vor.u32 %v1161_v57, %v1160_v38  ;;  %v3711_v57 = vrot.slane %v2620_v13, 1 }
  0x95   : > { %899 = vrot.lane.b32.xlu1 %v846_v47, %s2118_s7  ;;  %769 = vst.msk [vmem:[#allocation2] sm:$0xff] %vm768_vm9, %v715_v61  ;;  %v3709_v61 = vrot.slane %v2349_v9, 2 }
  0x96   : > { %v539_v10 = vpop.permute.xlu0 %538  ;;  %v1163_v38 = vsel %vm1140_vm5, %v2905_v20, %v3053_v3  ;;  %v607_v20 = vrot.slane %v2389_v54, 1  ;;  %v1378_v54 = vld [vmem:[#allocation2 + $0x28] sm:$0xff] }
  0x97   : > { %v1003_v63 = vpop.permute.xlu1 %1002  ;;  %584 = vst.msk [vmem:[#allocation2 + $0x90] sm:$0xff] %vm574_vm7, %v539_v10  ;;  %v3051_v47 = vsel %vm946_vm1, %v3709_v61, %v958_v50  ;;  %v418_v10 = vor.u32 %v2624_v42, %v3711_v57  ;;  %v3712_v61 = vrot.slane %v2614_v59, 1  ;;  %v625_v57 = vrot.slane %v2384_v49, 1 }
  0x98   : > { %695 = vst.msk [vmem:[#allocation2 + $0x90] sm:$0xff] %vm685_vm8, %v650_v7  ;;  %992 = vrot.lane.b32.xlu0 %v2903_v14, %s2116_s28  ;;  %v3710_v14 = vrot.slane %v2331_v62, 2 }
  0x99   : > { %1010 = vrot.lane.b32.xlu1 %v2896_v11, %s2116_s28  ;;  %778 = vst.msk [vmem:[#allocation2 + $0x90] sm:$0xff] %vm768_vm9, %v733_v37  ;;  %v3062_v11 = vor.u32 %v1197_v26, %v1196_v28  ;;  %v422_v28 = vrot.slane %v2844_v45, 1 }
  0x9a   : > { %v874_v7 = vpop.permute.xlu0 %873  ;;  %v3060_v34 = vsel %vm946_vm1, %v3710_v14, %v976_v44 }
  0x9b   : > { %v892_v37 = vpop.permute.xlu1 %891  ;;  %928 = vst.msk [vmem:[#allocation2] sm:$0xff] %vm927_vm10, %v874_v7  ;;  %v490_v7 = vor.u32 %v2617_v46, %v3712_v61  ;;  %v423_v13 = vsel %vm371_vm2, %v418_v10, %v422_v28  ;;  %v847_v10 = vrot.slane %v3014_v4, 1  ;;  %v3117_v61 = vsel %vm593_vm0, %v605_v27, %v607_v20  ;;  %v1376_v27 = vld [vmem:[#allocation2 + $0x18] sm:$0xff] }
  0x9c   : > { %937 = vst.msk [vmem:[#allocation2 + $0x90] sm:$0xff] %vm927_vm10, %v892_v37  ;;  %1075 = vrot.lane.b32.xlu0 %v3051_v47, %s2119_s10  ;;  %v812_v37 = vrot.slane %v3005_v48, 2 }
  0x9d   : > { %1039 = vst.msk [vmem:[#allocation2] sm:$0xff] %vm1038_vm11, %v985_v31  ;;  %1093 = vrot.lane.b32.xlu1 %v3060_v34, %s2119_s10  ;;  %1048 = vst.msk [vmem:[#allocation2 + $0x90] sm:$0xff] %vm1038_vm11, %v1003_v63  ;;  %v1199_v31 = vsel %vm1140_vm5, %v2907_v21, %v3062_v11  ;;  %v494_v63 = vrot.slane %v2825_v40, 1  ;;  %v811_v21 = vrot.slane %v3008_v43, 1 }
  0x9e   : > { %v1068_v26 = vpop.permute.xlu0 %1067 }
  0x9f   : > { %v1086_v14 = vpop.permute.xlu1 %1085  ;;  %1122 = vst.msk [vmem:[#allocation2] sm:$0xff] %vm1121_vm12, %v1068_v26  ;;  %v495_v59 = vsel %vm371_vm2, %v490_v7, %v494_v63  ;;  %v848_v26 = vrot.slane %v3011_v35, 2  ;;  %v3119_v7 = vor.u32 %v812_v37, %v811_v21  ;;  %v3141_v37 = vshll.u32 %v2461_v39, 16 }
  0xa0   : > { %1131 = vst.msk [vmem:[#allocation2 + $0x90] sm:$0xff] %vm1121_vm12, %v1086_v14  ;;  %1234 = vrot.lane.b32.xlu0 %v1163_v38, %s2120_s17 }
  0xa1   : > { %1252 = vrot.lane.b32.xlu1 %v1199_v31, %s2120_s17  ;;  %v814_v21 = vsel %vm787_vm4, %v2975_v23, %v3119_v7 }
  0xa2   : > { %v1227_v42 = vpop.permute.xlu0 %1226 }
  0xa3   : > { %v1245_v46 = vpop.permute.xlu1 %1244  ;;  %1281 = vst.msk [vmem:[#allocation2] sm:$0xff] %vm1280_vm13, %v1227_v42  ;;  %v3713_v42 = vrot.slane %v2331_v62, 1  ;;  %v1311_v62 = vrot.slane %v2461_v39, 3 }
  0xa4   : > { %1290 = vst.msk [vmem:[#allocation2 + $0x90] sm:$0xff] %vm1280_vm13, %v1245_v46  ;;  %530 = vrot.lane.b32.xlu0 %v423_v13, %s2117_s29 }
  0xa5   : > { %548 = vrot.lane.b32.xlu1 %v495_v59, %s2117_s29  ;;  %v3128_v59 = vor.u32 %v848_v26, %v847_v10 }
  0xa6   : > { %v523_v38 = vpop.permute.xlu0 %522 }
  0xa7   : > { %v541_v31 = vpop.permute.xlu1 %540  ;;  %576 = vst.msk [vmem:[#allocation2 + $0x10] sm:$0xff] %vm574_vm7, %v523_v38  ;;  %v3144_v38 = vshrl.u32 %v2461_v39, 16  ;;  %v850_v26 = vsel %vm787_vm4, %v2973_v55, %v3128_v59  ;;  %v960_v55 = vrot.slane %v2461_v39, 2 }
  0xa8   : > { %585 = vst.msk [vmem:[#allocation2 + $0xa0] sm:$0xff] %vm574_vm7, %v541_v31  ;;  %641 = vrot.lane.b32.xlu0 %v2971_v5, %s2115_s27  ;;  %v3126_v5 = vsel %vm593_vm0, %v3713_v42, %v625_v57  ;;  %v3714_v31 = vrot.slane %v2458_v36, 3  ;;  %v1165_v42 = vrot.slane %v3141_v37, 3 }
  0xa9   : > { %659 = vrot.lane.b32.xlu1 %v2982_v16, %s2115_s27  ;;  %v1394_v16 = vld [vmem:[#allocation2 + $0xa8] sm:$0xff] }
  0xaa   : > { %v634_v14 = vpop.permute.xlu0 %633  ;;  %v1373_v13 = vld [vmem:[#allocation2] sm:$0xff]  ;;  %v1330_v23 = vsel %vm1299_vm6, %v1327_v8, %v3714_v31  ;;  %v1164_v8 = vrot.slane %v3144_v38, 2  ;;  %v498_v31 = vor.u32 %v2828_v18, %v494_v63 }
  0xab   : > { %v652_v46 = vpop.permute.xlu1 %651  ;;  %687 = vst.msk [vmem:[#allocation2 + $0x10] sm:$0xff] %vm685_vm8, %v634_v14  ;;  %1575 = vmatmul.mubr.bf16.vlgmr.msra.gmra.mrb[0].mxu0 %v1373_v13  ;;  %v1391_v9 = vld [vmem:[#allocation2 + $0x90] sm:$0xff]  ;;  %v1312_v14 = vsel %vm1299_vm6, %v1309_v53, %v1311_v62 }
  0xac   : > { %696 = vst.msk [vmem:[#allocation2 + $0xa0] sm:$0xff] %vm685_vm8, %v652_v46  ;;  %1647 = vmatmul.mubr.bf16.vlgmr.msra.gmra.mrb[0].mxu1 %v1391_v9  ;;  %724 = vrot.lane.b32.xlu0 %v3117_v61, %s2114_s26  ;;  %v3181_v46 = vsel %vm946_vm1, %v958_v50, %v960_v55  ;;  %v3183_v9 = vor.u32 %v1165_v42, %v1164_v8 }
  0xad   : > { %742 = vrot.lane.b32.xlu1 %v3126_v5, %s2114_s26  ;;  %1997 = vmatprep.mubr.msk.bf16.mxu1 %vm349_vm3, %v1394_v16  ;;  %1369 = vst.msk [vmem:[#allocation2 + $0xe8] sm:$0xff] %vm349_vm3, %v1330_v23  ;;  %1360 = vst.msk [vmem:[#allocation2 + $0x58] sm:$0xff] %vm349_vm3, %v1312_v14  ;;  %v426_v50 = vor.u32 %v2847_v17, %v422_v28  ;;  %v502_v23 = vrot.slane %v3011_v35, 1  ;;  %v609_v17 = vrot.slane %v2461_v39, 1  ;;  %v1315_v39 = vrot.slane %v2210_v15, 3 }
  0xae   : > { %v717_v10 = vpop.permute.xlu0 %716  ;;  %1988 = vmatprep.mubr.msk.bf16.mxu0 %vm349_vm3, %v1376_v27 }
  0xaf   : > { %v735_v13 = vpop.permute.xlu1 %734  ;;  %770 = vst.msk [vmem:[#allocation2 + $0x10] sm:$0xff] %vm768_vm9, %v717_v10  ;;  %v503_v40 = vsel %vm371_vm2, %v498_v31, %v502_v23 }
  0xb0   : > { %779 = vst.msk [vmem:[#allocation2 + $0xa0] sm:$0xff] %vm768_vm9, %v735_v13  ;;  %883 = vrot.lane.b32.xlu0 %v814_v21, %s2118_s7  ;;  %v3715_v21 = vrot.slane %v2458_v36, 2  ;;  %v1167_v36 = vsel %vm1140_vm5, %v3053_v3, %v3183_v9  ;;  %v815_v3 = vrot.slane %v3144_v38, 1  ;;  %v3240_v13 = vsel %vm593_vm0, %v607_v20, %v609_v17 }
  0xb1   : > { %901 = vrot.lane.b32.xlu1 %v850_v26, %s2118_s7  ;;  %v1203_v26 = vsel %vm1140_vm5, %v3062_v11, %v2709_v30  ;;  %v816_v11 = vrot.slane %v3141_v37, 2  ;;  %v1313_v20 = vrot.slane %v2198_v12, 3 }
  0xb2   : > { %v876_v53 = vpop.permute.xlu0 %875  ;;  %v3190_v10 = vsel %vm946_vm1, %v976_v44, %v3715_v21  ;;  %v430_v44 = vrot.slane %v3005_v48, 1 }
  0xb3   : > { %v894_v16 = vpop.permute.xlu1 %893  ;;  %929 = vst.msk [vmem:[#allocation2 + $0x10] sm:$0xff] %vm927_vm10, %v876_v53  ;;  %v3242_v8 = vor.u32 %v816_v11, %v815_v3  ;;  %v1314_v21 = vsel %vm1299_vm6, %v1311_v62, %v1313_v20 }
  0xb4   : > { %938 = vst.msk [vmem:[#allocation2 + $0xa0] sm:$0xff] %vm927_vm10, %v894_v16  ;;  %994 = vrot.lane.b32.xlu0 %v3051_v47, %s2116_s28  ;;  %v431_v45 = vsel %vm371_vm2, %v426_v50, %v430_v44  ;;  %v3248_v16 = vsel %vm593_vm0, %v625_v57, %v2712_v19  ;;  %v854_v57 = vsel %vm787_vm4, %v3128_v59, %v2756_v56  ;;  %v962_v56 = vrot.slane %v2198_v12, 2 }
  0xb5   : > { %1012 = vrot.lane.b32.xlu1 %v3060_v34, %s2116_s28  ;;  %v818_v49 = vsel %vm787_vm4, %v3119_v7, %v3242_v8  ;;  %1361 = vst.msk [vmem:[#allocation2 + $0x68] sm:$0xff] %vm349_vm3, %v1314_v21  ;;  %v1168_v7 = vrot.slane %v2229_v25, 2  ;;  %v1169_v59 = vrot.slane %v2226_v24, 3 }
  0xb6   : > { %v987_v27 = vpop.permute.xlu0 %986  ;;  %v3289_v62 = vsel %vm946_vm1, %v960_v55, %v962_v56  ;;  %v434_v55 = vor.u32 %v3008_v43, %v430_v44  ;;  %v820_v44 = vrot.slane %v2226_v24, 2 }
  0xb7   : > { %v1005_v47 = vpop.permute.xlu1 %1004  ;;  %1040 = vst.msk [vmem:[#allocation2 + $0x10] sm:$0xff] %vm1038_vm11, %v987_v27 }
  0xb8   : > { %1049 = vst.msk [vmem:[#allocation2 + $0xa0] sm:$0xff] %vm1038_vm11, %v1005_v47  ;;  %1077 = vrot.lane.b32.xlu0 %v3181_v46, %s2119_s10 }
  0xb9   : > { %1095 = vrot.lane.b32.xlu1 %v3190_v10, %s2119_s10 }
  0xba   : > { %v1070_v34 = vpop.permute.xlu0 %1069 }
  0xbb   : > { %v1088_v14 = vpop.permute.xlu1 %1087  ;;  %1123 = vst.msk [vmem:[#allocation2 + $0x10] sm:$0xff] %vm1121_vm12, %v1070_v34  ;;  %v3291_v34 = vor.u32 %v1169_v59, %v1168_v7 }
  0xbc   : > { %1132 = vst.msk [vmem:[#allocation2 + $0xa0] sm:$0xff] %vm1121_vm12, %v1088_v14  ;;  %1236 = vrot.lane.b32.xlu0 %v1167_v36, %s2120_s17 }
  0xbd   : > { %1254 = vrot.lane.b32.xlu1 %v1203_v26, %s2120_s17 }
  0xbe   : > { %v1229_v30 = vpop.permute.xlu0 %1228 }
  0xbf   : > { %v1247_v18 = vpop.permute.xlu1 %1246  ;;  %1282 = vst.msk [vmem:[#allocation2 + $0x10] sm:$0xff] %vm1280_vm13, %v1229_v30 }
  0xc0   : > { %1291 = vst.msk [vmem:[#allocation2 + $0xa0] sm:$0xff] %vm1280_vm13, %v1247_v18  ;;  %532 = vrot.lane.b32.xlu0 %v431_v45, %s2117_s29  ;;  %v506_v45 = vor.u32 %v3014_v4, %v502_v23 }
  0xc1   : > { %550 = vrot.lane.b32.xlu1 %v503_v40, %s2117_s29 }
  0xc2   : > { %v525_v28 = vpop.permute.xlu0 %524 }
  0xc3   : > { %v543_v63 = vpop.permute.xlu1 %542  ;;  %577 = vst.msk [vmem:[#allocation2 + $0x20] sm:$0xff] %vm574_vm7, %v525_v28  ;;  %v1398_v28 = vld [vmem:[#allocation2 + $0xc8] sm:$0xff] }
  0xc4   : > { %586 = vst.msk [vmem:[#allocation2 + $0xb0] sm:$0xff] %vm574_vm7, %v543_v63  ;;  %643 = vrot.lane.b32.xlu0 %v3117_v61, %s2115_s27  ;;  %v1396_v61 = vld [vmem:[#allocation2 + $0xb8] sm:$0xff] }
  0xc5   : > { %661 = vrot.lane.b32.xlu1 %v3126_v5, %s2115_s27 }
  0xc6   : > { %v636_v42 = vpop.permute.xlu0 %635  ;;  %v1375_v53 = vld [vmem:[#allocation2 + $0x10] sm:$0xff] }
  0xc7   : > { %v654_v27 = vpop.permute.xlu1 %653  ;;  %688 = vst.msk [vmem:[#allocation2 + $0x20] sm:$0xff] %vm685_vm8, %v636_v42  ;;  %1583 = vmatmul.mubr.bf16.gmra.mrb[4].mxu0 %v1375_v53  ;;  %v1393_v5 = vld [vmem:[#allocation2 + $0xa0] sm:$0xff] }
  0xc8   : > { %697 = vst.msk [vmem:[#allocation2 + $0xb0] sm:$0xff] %vm685_vm8, %v654_v27  ;;  %1655 = vmatmul.mubr.bf16.gmra.mrb[4].mxu1 %v1393_v5  ;;  %726 = vrot.lane.b32.xlu0 %v3240_v13, %s2114_s26 }
  0xc9   : > { %744 = vrot.lane.b32.xlu1 %v3248_v16, %s2114_s26  ;;  %1998 = vmatprep.mubr.msk.bf16.mxu1 %vm349_vm3, %v1396_v61 }
  0xca   : > { %v719_v19 = vpop.permute.xlu0 %718  ;;  %1989 = vmatprep.mubr.msk.bf16.mxu0 %vm349_vm3, %v1378_v54  ;;  %v3718_v54 = vrot.slane %v2210_v15, 2 }
  0xcb   : > { %v737_v47 = vpop.permute.xlu1 %736  ;;  %771 = vst.msk [vmem:[#allocation2 + $0x20] sm:$0xff] %vm768_vm9, %v719_v19 }
  0xcc   : > { %780 = vst.msk [vmem:[#allocation2 + $0xb0] sm:$0xff] %vm768_vm9, %v737_v47  ;;  %885 = vrot.lane.b32.xlu0 %v818_v49, %s2118_s7 }
  0xcd   : > { %903 = vrot.lane.b32.xlu1 %v854_v57, %s2118_s7  ;;  %v3719_v57 = vld [vmem:[#allocation8_spill] sm:$0xff] }
  0xce   : > { %v878_v36 = vpop.permute.xlu0 %877 }
  0xcf   : > { %v896_v50 = vpop.permute.xlu1 %895  ;;  %930 = vst.msk [vmem:[#allocation2 + $0x20] sm:$0xff] %vm927_vm10, %v878_v36 }
  0xd0   : > { %939 = vst.msk [vmem:[#allocation2 + $0xb0] sm:$0xff] %vm927_vm10, %v896_v50  ;;  %996 = vrot.lane.b32.xlu0 %v3181_v46, %s2116_s28  ;;  %v1171_v46 = vsel %vm1140_vm5, %v3183_v9, %v3291_v34  ;;  %v3716_v9 = vrot.slane %v2644_v41, 1  ;;  %v3717_v41 = vrot.slane %v2198_v12, 1  ;;  %v1400_v50 = vld [vmem:[#allocation2 + $0xd8] sm:$0xff] }
  0xd1   : > { %1014 = vrot.lane.b32.xlu1 %v3190_v10, %s2116_s28  ;;  %v438_v10 = vrot.slane %v3141_v37, 1  ;;  %v3721_v37 = vld [vmem:[#allocation9_spill] sm:$0xff] }
  0xd2   : > { %v989_v26 = vpop.permute.xlu0 %988  ;;  %v511_v35 = vsel %vm371_vm2, %v506_v45, %v3716_v9  ;;  %v3725_v45 = vld [vmem:[#allocation3_spill] sm:$0xff] }
  0xd3   : > { %v1007_v31 = vpop.permute.xlu1 %1006  ;;  %1041 = vst.msk [vmem:[#allocation2 + $0x20] sm:$0xff] %vm1038_vm11, %v989_v26  ;;  %v439_v48 = vsel %vm371_vm2, %v434_v55, %v438_v10  ;;  %v442_v12 = vor.u32 %v3144_v38, %v438_v10  ;;  %v1382_v26 = vld [vmem:[#allocation2 + $0x48] sm:$0xff] }
  0xd4   : > { %1050 = vst.msk [vmem:[#allocation2 + $0xb0] sm:$0xff] %vm1038_vm11, %v1007_v31  ;;  %1079 = vrot.lane.b32.xlu0 %v3289_v62, %s2119_s10  ;;  %v3723_v31 = vld [vmem:[#allocation4_spill] sm:$0xff] }
  0xd5   : > { %1097 = vrot.lane.b32.xlu1 %v2677_v60, %s2119_s10 }
  0xd6   : > { %v1072_v14 = vpop.permute.xlu0 %1071 }
  0xd7   : > { %v1090_v30 = vpop.permute.xlu1 %1089  ;;  %1124 = vst.msk [vmem:[#allocation2 + $0x20] sm:$0xff] %vm1121_vm12, %v1072_v14 }
  0xd8   : > { %1133 = vst.msk [vmem:[#allocation2 + $0xb0] sm:$0xff] %vm1121_vm12, %v1090_v30  ;;  %1238 = vrot.lane.b32.xlu0 %v1171_v46, %s2120_s17  ;;  %v3724_v46 = vld [vmem:[#allocation6_spill] sm:$0xff]  ;;  %v3726_v30 = vrot.slane %v3725_v45, 3 }
  0xd9   : > { %1256 = vrot.lane.b32.xlu1 %v2728_v29, %s2120_s17  ;;  %v819_v29 = vrot.slane %v2229_v25, 1  ;;  %v612_v25 = vsel %vm593_vm0, %v609_v17, %v3717_v41  ;;  %v1384_v41 = vld [vmem:[#allocation2 + $0x58] sm:$0xff] }
  0xda   : > { %v1231_v43 = vpop.permute.xlu0 %1230 }
  0xdb   : > { %v1249_v4 = vpop.permute.xlu1 %1248  ;;  %1283 = vst.msk [vmem:[#allocation2 + $0x20] sm:$0xff] %vm1280_vm13, %v1231_v43  ;;  %v3337_v18 = vor.u32 %v820_v44, %v819_v29 }
  0xdc   : > { %1292 = vst.msk [vmem:[#allocation2 + $0xb0] sm:$0xff] %vm1280_vm13, %v1249_v4  ;;  %534 = vrot.lane.b32.xlu0 %v439_v48, %s2117_s29  ;;  %v1318_v48 = vsel %vm1299_vm6, %v1315_v39, %v3726_v30 }
  0xdd   : > { %552 = vrot.lane.b32.xlu1 %v511_v35, %s2117_s29  ;;  %v822_v17 = vsel %vm787_vm4, %v3242_v8, %v3337_v18  ;;  %v1173_v8 = vrot.slane %v2248_v32, 3  ;;  %v826_v55 = vsel %vm787_vm4, %v3337_v18, %v3724_v46  ;;  %1363 = vst.msk [vmem:[#allocation2 + $0x88] sm:$0xff] %vm349_vm3, %v1318_v48  ;;  %v3727_v35 = vld [vmem:[#allocation5_spill] sm:$0xff] }
  0xde   : > { %v527_v23 = vpop.permute.xlu0 %526 }
  0xdf   : > { %v545_v40 = vpop.permute.xlu1 %544  ;;  %578 = vst.msk [vmem:[#allocation2 + $0x30] sm:$0xff] %vm574_vm7, %v527_v23 }
  0xe0   : > { %587 = vst.msk [vmem:[#allocation2 + $0xc0] sm:$0xff] %vm574_vm7, %v545_v40  ;;  %645 = vrot.lane.b32.xlu0 %v3240_v13, %s2115_s27  ;;  %v1380_v13 = vld [vmem:[#allocation2 + $0x38] sm:$0xff] }
  0xe1   : > { %663 = vrot.lane.b32.xlu1 %v3248_v16, %s2115_s27  ;;  %v1316_v16 = vsel %vm1299_vm6, %v1313_v20, %v1315_v39 }
  0xe2   : > { %v638_v3 = vpop.permute.xlu0 %637  ;;  %v1377_v11 = vld [vmem:[#allocation2 + $0x20] sm:$0xff]  ;;  %1362 = vst.msk [vmem:[#allocation2 + $0x78] sm:$0xff] %vm349_vm3, %v1316_v16 }
  0xe3   : > { %v656_v63 = vpop.permute.xlu1 %655  ;;  %689 = vst.msk [vmem:[#allocation2 + $0x30] sm:$0xff] %vm685_vm8, %v638_v3  ;;  %1591 = vmatmul.mubr.bf16.gmra.mrb[8].mxu0 %v1377_v11  ;;  %v1395_v42 = vld [vmem:[#allocation2 + $0xb0] sm:$0xff]  ;;  %v1402_v3 = vld [vmem:[#allocation2 + $0xe8] sm:$0xff] }
  0xe4   : > { %698 = vst.msk [vmem:[#allocation2 + $0xc0] sm:$0xff] %vm685_vm8, %v656_v63  ;;  %1663 = vmatmul.mubr.bf16.gmra.mrb[8].mxu1 %v1395_v42  ;;  %728 = vrot.lane.b32.xlu0 %v612_v25, %s2114_s26 }
  0xe5   : > { %746 = vrot.lane.b32.xlu1 %v2738_v58, %s2114_s26  ;;  %1999 = vmatprep.mubr.msk.bf16.mxu1 %vm349_vm3, %v1398_v28  ;;  %v1172_v58 = vrot.slane %v2251_v33, 2  ;;  %v965_v33 = vsel %vm946_vm1, %v962_v56, %v3718_v54 }
  0xe6   : > { %v721_v53 = vpop.permute.xlu0 %720  ;;  %1990 = vmatprep.mubr.msk.bf16.mxu0 %vm349_vm3, %v1380_v13 }
  0xe7   : > { %v739_v61 = vpop.permute.xlu1 %738  ;;  %772 = vst.msk [vmem:[#allocation2 + $0x30] sm:$0xff] %vm768_vm9, %v721_v53 }
  0xe8   : > { %781 = vst.msk [vmem:[#allocation2 + $0xc0] sm:$0xff] %vm768_vm9, %v739_v61  ;;  %887 = vrot.lane.b32.xlu0 %v822_v17, %s2118_s7 }
  0xe9   : > { %905 = vrot.lane.b32.xlu1 %v2764_v2, %s2118_s7  ;;  %v3374_v2 = vor.u32 %v1173_v8, %v1172_v58 }
  0xea   : > { %v880_v27 = vpop.permute.xlu0 %879 }
  0xeb   : > { %v898_v5 = vpop.permute.xlu1 %897  ;;  %931 = vst.msk [vmem:[#allocation2 + $0x30] sm:$0xff] %vm927_vm10, %v880_v27 }
  0xec   : > { %940 = vst.msk [vmem:[#allocation2 + $0xc0] sm:$0xff] %vm927_vm10, %v898_v5  ;;  %998 = vrot.lane.b32.xlu0 %v3289_v62, %s2116_s28  ;;  %v1386_v5 = vld [vmem:[#allocation2 + $0x68] sm:$0xff] }
  0xed   : > { %1016 = vrot.lane.b32.xlu1 %v2677_v60, %s2116_s28  ;;  %v1175_v60 = vsel %vm1140_vm5, %v3291_v34, %v3374_v2 }
  0xee   : > { %v991_v32 = vpop.permute.xlu0 %990 }
  0xef   : > { %v1009_v20 = vpop.permute.xlu1 %1008  ;;  %1042 = vst.msk [vmem:[#allocation2 + $0x30] sm:$0xff] %vm1038_vm11, %v991_v32 }
  0xf0   : > { %1051 = vst.msk [vmem:[#allocation2 + $0xc0] sm:$0xff] %vm1038_vm11, %v1009_v20  ;;  %1081 = vrot.lane.b32.xlu0 %v965_v33, %s2119_s10 }
  0xf1   : > { %1099 = vrot.lane.b32.xlu1 %v2794_v6, %s2119_s10  ;;  %v3720_v6 = vrot.slane %v2226_v24, 1  ;;  %v3722_v24 = vld [vmem:[#allocation10_spill] sm:$0xff] }
  0xf2   : > { %v1074_v49 = vpop.permute.xlu0 %1073 }
  0xf3   : > { %v1092_v19 = vpop.permute.xlu1 %1091  ;;  %1125 = vst.msk [vmem:[#allocation2 + $0x30] sm:$0xff] %vm1121_vm12, %v1074_v49  ;;  %v447_v21 = vsel %vm371_vm2, %v442_v12, %v3720_v6 }
  0xf4   : > { %1134 = vst.msk [vmem:[#allocation2 + $0xc0] sm:$0xff] %vm1121_vm12, %v1092_v19  ;;  %1240 = vrot.lane.b32.xlu0 %v1175_v60, %s2120_s17 }
  0xf5   : > { %1258 = vrot.lane.b32.xlu1 %v3719_v57, %s2120_s17 }
  0xf6   : > { %v1233_v47 = vpop.permute.xlu0 %1232 }
  0xf7   : > { %v1251_v56 = vpop.permute.xlu1 %1250  ;;  %1284 = vst.msk [vmem:[#allocation2 + $0x30] sm:$0xff] %vm1280_vm13, %v1233_v47 }
  0xf8   : > { %1293 = vst.msk [vmem:[#allocation2 + $0xc0] sm:$0xff] %vm1280_vm13, %v1251_v56  ;;  %536 = vrot.lane.b32.xlu0 %v447_v21, %s2117_s29 }
  0xf9   : > { %554 = vrot.lane.b32.xlu1 %v3721_v37, %s2117_s29 }
  0xfa   : > { %v529_v38 = vpop.permute.xlu0 %528 }
  0xfb   : > { %v547_v7 = vpop.permute.xlu1 %546  ;;  %579 = vst.msk [vmem:[#allocation2 + $0x40] sm:$0xff] %vm574_vm7, %v529_v38 }
  0xfc   : > { %588 = vst.msk [vmem:[#allocation2 + $0xd0] sm:$0xff] %vm574_vm7, %v547_v7  ;;  %647 = vrot.lane.b32.xlu0 %v612_v25, %s2115_s27 }
  0xfd   : > { %665 = vrot.lane.b32.xlu1 %v3722_v24, %s2115_s27  ;;  %v1388_v24 = vld [vmem:[#allocation2 + $0x78] sm:$0xff]  ;;  %s3521_s27 = scalar_lea.vmem %s3643_s3, %s2026_s24 }
  0xfe   : > { %v640_v59 = vpop.permute.xlu0 %639  ;;  %v1379_v36 = vld [vmem:[#allocation2 + $0x30] sm:$0xff] }
  0xff   : > { %v658_v62 = vpop.permute.xlu1 %657  ;;  %690 = vst.msk [vmem:[#allocation2 + $0x40] sm:$0xff] %vm685_vm8, %v640_v59  ;;  %1599 = vmatmul.mubr.bf16.gmra.mrb[12].mxu0 %v1379_v36  ;;  %v1397_v34 = vld [vmem:[#allocation2 + $0xc0] sm:$0xff] }
 0x100   : > { %699 = vst.msk [vmem:[#allocation2 + $0xd0] sm:$0xff] %vm685_vm8, %v658_v62  ;;  %1671 = vmatmul.mubr.bf16.gmra.mrb[12].mxu1 %v1397_v34  ;;  %730 = vrot.lane.b32.xlu0 %v3723_v31, %s2114_s26 }
 0x101   : > { %748 = vrot.lane.b32.xlu1 %v2914_v51, %s2114_s26  ;;  %2000 = vmatprep.mubr.msk.bf16.mxu1 %vm349_vm3, %v1400_v50  ;;  %v1406_v50 = vld [vmem:[#allocation2 + $0x108] sm:$0xff] }
 0x102   : > { %v723_v10 = vpop.permute.xlu0 %722  ;;  %1991 = vmatprep.mubr.msk.bf16.mxu0 %vm349_vm3, %v1382_v26 }
 0x103   : > { %v741_v14 = vpop.permute.xlu1 %740  ;;  %773 = vst.msk [vmem:[#allocation2 + $0x40] sm:$0xff] %vm768_vm9, %v723_v10 }
 0x104   : > { %782 = vst.msk [vmem:[#allocation2 + $0xd0] sm:$0xff] %vm768_vm9, %v741_v14  ;;  %889 = vrot.lane.b32.xlu0 %v826_v55, %s2118_s7 }
 0x105   : > { %907 = vrot.lane.b32.xlu1 %v2935_v0, %s2118_s7  ;;  %v3728_v0 = vld [vmem:[#allocation7_spill] sm:$0xff] }
 0x106   : > { %v882_v51 = vpop.permute.xlu0 %881  ;;  %v1179_v4 = vsel %vm1140_vm5, %v3374_v2, %v3728_v0  ;;  %v1404_v2 = vld [vmem:[#allocation2 + $0xf8] sm:$0xff] }
 0x107   : > { %v900_v43 = vpop.permute.xlu1 %899  ;;  %932 = vst.msk [vmem:[#allocation2 + $0x40] sm:$0xff] %vm927_vm10, %v882_v51 }
 0x108   : > { %941 = vst.msk [vmem:[#allocation2 + $0xd0] sm:$0xff] %vm927_vm10, %v900_v43  ;;  %1000 = vrot.lane.b32.xlu0 %v965_v33, %s2116_s28 }
 0x109   : > { %1018 = vrot.lane.b32.xlu1 %v2948_v22, %s2116_s28 }
 0x10a   : > { %v993_v15 = vpop.permute.xlu0 %992 }
 0x10b   : > { %v1011_v9 = vpop.permute.xlu1 %1010  ;;  %1043 = vst.msk [vmem:[#allocation2 + $0x40] sm:$0xff] %vm1038_vm11, %v993_v15 }
 0x10c   : > { %1052 = vst.msk [vmem:[#allocation2 + $0xd0] sm:$0xff] %vm1038_vm11, %v1011_v9  ;;  %1083 = vrot.lane.b32.xlu0 %v3727_v35, %s2119_s10  ;;  %v1390_v9 = vld [vmem:[#allocation2 + $0x88] sm:$0xff] }
 0x10d   : > { %1101 = vrot.lane.b32.xlu1 %v2962_v1, %s2119_s10 }
 0x10e   : > { %v1076_v29 = vpop.permute.xlu0 %1075 }
 0x10f   : > { %v1094_v44 = vpop.permute.xlu1 %1093  ;;  %1126 = vst.msk [vmem:[#allocation2 + $0x40] sm:$0xff] %vm1121_vm12, %v1076_v29 }
 0x110   : > { %1135 = vst.msk [vmem:[#allocation2 + $0xd0] sm:$0xff] %vm1121_vm12, %v1094_v44  ;;  %1242 = vrot.lane.b32.xlu0 %v1179_v4, %s2120_s17  ;;  %v1408_v4 = vld [vmem:[#allocation2 + $0x118] sm:$0xff] }
 0x111   : > { %1260 = vrot.lane.b32.xlu1 %v2992_v52, %s2120_s17 }
 0x112   : > { %v1235_v22 = vpop.permute.xlu0 %1234 }
 0x113   : > { %v1253_v23 = vpop.permute.xlu1 %1252  ;;  %1285 = vst.msk [vmem:[#allocation2 + $0x40] sm:$0xff] %vm1280_vm13, %v1235_v22 }
 0x114   : > { %1294 = vst.msk [vmem:[#allocation2 + $0xd0] sm:$0xff] %vm1280_vm13, %v1253_v23 }
 0x116   : > { %v531_v1 = vpop.permute.xlu0 %530 }
 0x117   : > { %v549_v40 = vpop.permute.xlu1 %548  ;;  %580 = vst.msk [vmem:[#allocation2 + $0x50] sm:$0xff] %vm574_vm7, %v531_v1 }
 0x118   : > { %589 = vst.msk [vmem:[#allocation2 + $0xe0] sm:$0xff] %vm574_vm7, %v549_v40 }
 0x11a   : > { %v642_v25 = vpop.permute.xlu0 %641  ;;  %v1381_v18 = vld [vmem:[#allocation2 + $0x40] sm:$0xff] }
 0x11b   : > { %v660_v11 = vpop.permute.xlu1 %659  ;;  %691 = vst.msk [vmem:[#allocation2 + $0x50] sm:$0xff] %vm685_vm8, %v642_v25  ;;  %1607 = vmatmul.mubr.bf16.gmra.mrb[16].mxu0 %v1381_v18  ;;  %v1399_v52 = vld [vmem:[#allocation2 + $0xd0] sm:$0xff]  ;;  %v3511_v18 = vld [vmem:[%s3642_s2] ss:$0 sm:$0xff] }
 0x11c   : > { %700 = vst.msk [vmem:[#allocation2 + $0xe0] sm:$0xff] %vm685_vm8, %v660_v11  ;;  %1679 = vmatmul.mubr.bf16.gmra.mrb[16].mxu1 %v1399_v52  ;;  %1992 = vmatprep.mubr.msk.bf16.mxu0 %vm349_vm3, %v1384_v41 }
 0x11d   : > { %2001 = vmatprep.mubr.msk.bf16.mxu1 %vm349_vm3, %v1402_v3 }
 0x11e   : > { %v725_v28 = vpop.permute.xlu0 %724 }
 0x11f   : > { %v743_v63 = vpop.permute.xlu1 %742  ;;  %774 = vst.msk [vmem:[#allocation2 + $0x50] sm:$0xff] %vm768_vm9, %v725_v28 }
 0x120   : > { %783 = vst.msk [vmem:[#allocation2 + $0xe0] sm:$0xff] %vm768_vm9, %v743_v63 }
 0x122   : > { %v884_v42 = vpop.permute.xlu0 %883 }
 0x123   : > { %v902_v13 = vpop.permute.xlu1 %901  ;;  %933 = vst.msk [vmem:[#allocation2 + $0x50] sm:$0xff] %vm927_vm10, %v884_v42 }
 0x124   : > { %942 = vst.msk [vmem:[#allocation2 + $0xe0] sm:$0xff] %vm927_vm10, %v902_v13 }
 0x126   : > { %v995_v39 = vpop.permute.xlu0 %994 }
 0x127   : > { %v1013_v17 = vpop.permute.xlu1 %1012  ;;  %1044 = vst.msk [vmem:[#allocation2 + $0x50] sm:$0xff] %vm1038_vm11, %v995_v39 }
 0x128   : > { %1053 = vst.msk [vmem:[#allocation2 + $0xe0] sm:$0xff] %vm1038_vm11, %v1013_v17 }
 0x12a   : > { %v1078_v53 = vpop.permute.xlu0 %1077 }
 0x12b   : > { %v1096_v16 = vpop.permute.xlu1 %1095  ;;  %1127 = vst.msk [vmem:[#allocation2 + $0x50] sm:$0xff] %vm1121_vm12, %v1078_v53 }
 0x12c   : > { %1136 = vst.msk [vmem:[#allocation2 + $0xe0] sm:$0xff] %vm1121_vm12, %v1096_v16 }
 0x12e   : > { %v1237_v61 = vpop.permute.xlu0 %1236 }
 0x12f   : > { %v1255_v58 = vpop.permute.xlu1 %1254  ;;  %1286 = vst.msk [vmem:[#allocation2 + $0x50] sm:$0xff] %vm1280_vm13, %v1237_v61 }
 0x130   : > { %1295 = vst.msk [vmem:[#allocation2 + $0xe0] sm:$0xff] %vm1280_vm13, %v1255_v58 }
 0x132   : > { %v533_v8 = vpop.permute.xlu0 %532 }
 0x133   : > { %v551_v27 = vpop.permute.xlu1 %550  ;;  %581 = vst.msk [vmem:[#allocation2 + $0x60] sm:$0xff] %vm574_vm7, %v533_v8 }
 0x134   : > { %590 = vst.msk [vmem:[#allocation2 + $0xf0] sm:$0xff] %vm574_vm7, %v551_v27 }
 0x136   : > { %v644_v54 = vpop.permute.xlu0 %643  ;;  %v1383_v33 = vld [vmem:[#allocation2 + $0x50] sm:$0xff] }
 0x137   : > { %v662_v32 = vpop.permute.xlu1 %661  ;;  %692 = vst.msk [vmem:[#allocation2 + $0x60] sm:$0xff] %vm685_vm8, %v644_v54  ;;  %1615 = vmatmul.mubr.bf16.gmra.mrb[20].mxu0 %v1383_v33  ;;  %v1401_v20 = vld [vmem:[#allocation2 + $0xe0] sm:$0xff] }
 0x138   : > { %701 = vst.msk [vmem:[#allocation2 + $0xf0] sm:$0xff] %vm685_vm8, %v662_v32  ;;  %1687 = vmatmul.mubr.bf16.gmra.mrb[20].mxu1 %v1401_v20  ;;  %1993 = vmatprep.mubr.msk.bf16.mxu0 %vm349_vm3, %v1386_v5 }
 0x139   : > { %2002 = vmatprep.mubr.msk.bf16.mxu1 %vm349_vm3, %v1404_v2 }
 0x13a   : > { %v727_v60 = vpop.permute.xlu0 %726 }
 0x13b   : > { %v745_v12 = vpop.permute.xlu1 %744  ;;  %775 = vst.msk [vmem:[#allocation2 + $0x60] sm:$0xff] %vm768_vm9, %v727_v60 }
 0x13c   : > { %784 = vst.msk [vmem:[#allocation2 + $0xf0] sm:$0xff] %vm768_vm9, %v745_v12 }
 0x13e   : > { %v886_v49 = vpop.permute.xlu0 %885 }
 0x13f   : > { %v904_v19 = vpop.permute.xlu1 %903  ;;  %934 = vst.msk [vmem:[#allocation2 + $0x60] sm:$0xff] %vm927_vm10, %v886_v49 }
 0x140   : > { %943 = vst.msk [vmem:[#allocation2 + $0xf0] sm:$0xff] %vm927_vm10, %v904_v19 }
 0x142   : > { %v997_v57 = vpop.permute.xlu0 %996 }
 0x143   : > { %v1015_v6 = vpop.permute.xlu1 %1014  ;;  %1045 = vst.msk [vmem:[#allocation2 + $0x60] sm:$0xff] %vm1038_vm11, %v997_v57 }
 0x144   : > { %1054 = vst.msk [vmem:[#allocation2 + $0xf0] sm:$0xff] %vm1038_vm11, %v1015_v6 }
 0x146   : > { %v1080_v21 = vpop.permute.xlu0 %1079 }
 0x147   : > { %v1098_v47 = vpop.permute.xlu1 %1097  ;;  %1128 = vst.msk [vmem:[#allocation2 + $0x60] sm:$0xff] %vm1121_vm12, %v1080_v21 }
 0x148   : > { %1137 = vst.msk [vmem:[#allocation2 + $0xf0] sm:$0xff] %vm1121_vm12, %v1098_v47 }
 0x14a   : > { %v1239_v56 = vpop.permute.xlu0 %1238 }
 0x14b   : > { %v1257_v37 = vpop.permute.xlu1 %1256  ;;  %1287 = vst.msk [vmem:[#allocation2 + $0x60] sm:$0xff] %vm1280_vm13, %v1239_v56 }
 0x14c   : > { %1296 = vst.msk [vmem:[#allocation2 + $0xf0] sm:$0xff] %vm1280_vm13, %v1257_v37 }
 0x14e   : > { %v535_v38 = vpop.permute.xlu0 %534 }
 0x14f   : > { %v553_v7 = vpop.permute.xlu1 %552  ;;  %582 = vst.msk [vmem:[#allocation2 + $0x70] sm:$0xff] %vm574_vm7, %v535_v38 }
 0x150   : > { %591 = vst.msk [vmem:[#allocation2 + $0x100] sm:$0xff] %vm574_vm7, %v553_v7 }
 0x152   : > { %v646_v59 = vpop.permute.xlu0 %645  ;;  %v1385_v36 = vld [vmem:[#allocation2 + $0x60] sm:$0xff] }
 0x153   : > { %v664_v62 = vpop.permute.xlu1 %663  ;;  %693 = vst.msk [vmem:[#allocation2 + $0x70] sm:$0xff] %vm685_vm8, %v646_v59  ;;  %1623 = vmatmul.mubr.bf16.gmra.mrb[24].mxu0 %v1385_v36  ;;  %v1403_v34 = vld [vmem:[#allocation2 + $0xf0] sm:$0xff] }
 0x154   : > { %702 = vst.msk [vmem:[#allocation2 + $0x100] sm:$0xff] %vm685_vm8, %v664_v62  ;;  %1695 = vmatmul.mubr.bf16.gmra.mrb[24].mxu1 %v1403_v34  ;;  %1994 = vmatprep.mubr.msk.bf16.mxu0 %vm349_vm3, %v1388_v24 }
 0x155   : > { %2003 = vmatprep.mubr.msk.bf16.mxu1 %vm349_vm3, %v1406_v50 }
 0x156   : > { %v729_v26 = vpop.permute.xlu0 %728 }
 0x157   : > { %v747_v31 = vpop.permute.xlu1 %746  ;;  %776 = vst.msk [vmem:[#allocation2 + $0x70] sm:$0xff] %vm768_vm9, %v729_v26 }
 0x158   : > { %785 = vst.msk [vmem:[#allocation2 + $0x100] sm:$0xff] %vm768_vm9, %v747_v31 }
 0x15a   : > { %v888_v46 = vpop.permute.xlu0 %887 }
 0x15b   : > { %v906_v55 = vpop.permute.xlu1 %905  ;;  %935 = vst.msk [vmem:[#allocation2 + $0x70] sm:$0xff] %vm927_vm10, %v888_v46 }
 0x15c   : > { %944 = vst.msk [vmem:[#allocation2 + $0x100] sm:$0xff] %vm927_vm10, %v906_v55 }
 0x15e   : > { %v999_v10 = vpop.permute.xlu0 %998 }
 0x15f   : > { %v1017_v14 = vpop.permute.xlu1 %1016  ;;  %1046 = vst.msk [vmem:[#allocation2 + $0x70] sm:$0xff] %vm1038_vm11, %v999_v10 }
 0x160   : > { %1055 = vst.msk [vmem:[#allocation2 + $0x100] sm:$0xff] %vm1038_vm11, %v1017_v14 }
 0x162   : > { %v1082_v45 = vpop.permute.xlu0 %1081 }
 0x163   : > { %v1100_v30 = vpop.permute.xlu1 %1099  ;;  %1129 = vst.msk [vmem:[#allocation2 + $0x70] sm:$0xff] %vm1121_vm12, %v1082_v45 }
 0x164   : > { %1138 = vst.msk [vmem:[#allocation2 + $0x100] sm:$0xff] %vm1121_vm12, %v1100_v30 }
 0x166   : > { %v1241_v48 = vpop.permute.xlu0 %1240 }
 0x167   : > { %v1259_v51 = vpop.permute.xlu1 %1258  ;;  %1288 = vst.msk [vmem:[#allocation2 + $0x70] sm:$0xff] %vm1280_vm13, %v1241_v48 }
 0x168   : > { %1297 = vst.msk [vmem:[#allocation2 + $0x100] sm:$0xff] %vm1280_vm13, %v1259_v51 }
 0x16a   : > { %v537_v43 = vpop.permute.xlu0 %536 }
 0x16b   : > { %v555_v15 = vpop.permute.xlu1 %554  ;;  %583 = vst.msk [vmem:[#allocation2 + $0x80] sm:$0xff] %vm574_vm7, %v537_v43 }
 0x16c   : > { %592 = vst.msk [vmem:[#allocation2 + $0x110] sm:$0xff] %vm574_vm7, %v555_v15 }
 0x16e   : > { %v648_v35 = vpop.permute.xlu0 %647  ;;  %v1387_v0 = vld [vmem:[#allocation2 + $0x70] sm:$0xff] }
 0x16f   : > { %v666_v29 = vpop.permute.xlu1 %665  ;;  %694 = vst.msk [vmem:[#allocation2 + $0x80] sm:$0xff] %vm685_vm8, %v648_v35  ;;  %1631 = vmatmul.mubr.bf16.gmra.mrb[28].mxu0 %v1387_v0  ;;  %v1405_v44 = vld [vmem:[#allocation2 + $0x100] sm:$0xff] }
 0x170   : > { %703 = vst.msk [vmem:[#allocation2 + $0x110] sm:$0xff] %vm685_vm8, %v666_v29  ;;  %1703 = vmatmul.mubr.bf16.gmra.mrb[28].mxu1 %v1405_v44  ;;  %1995 = vmatprep.mubr.msk.bf16.mxu0 %vm349_vm3, %v1390_v9 }
 0x171   : > { %2004 = vmatprep.mubr.msk.bf16.mxu1 %vm349_vm3, %v1408_v4 }
 0x172   : > { %v731_v22 = vpop.permute.xlu0 %730 }
 0x173   : > { %v749_v23 = vpop.permute.xlu1 %748  ;;  %777 = vst.msk [vmem:[#allocation2 + $0x80] sm:$0xff] %vm768_vm9, %v731_v22 }
 0x174   : > { %786 = vst.msk [vmem:[#allocation2 + $0x110] sm:$0xff] %vm768_vm9, %v749_v23 }
 0x176   : > { %v890_v1 = vpop.permute.xlu0 %889 }
 0x177   : > { %v908_v40 = vpop.permute.xlu1 %907  ;;  %936 = vst.msk [vmem:[#allocation2 + $0x80] sm:$0xff] %vm927_vm10, %v890_v1 }
 0x178   : > { %945 = vst.msk [vmem:[#allocation2 + $0x110] sm:$0xff] %vm927_vm10, %v908_v40 }
 0x17a   : > { %v1001_v41 = vpop.permute.xlu0 %1000 }
 0x17b   : > { %v1019_v25 = vpop.permute.xlu1 %1018  ;;  %1047 = vst.msk [vmem:[#allocation2 + $0x80] sm:$0xff] %vm1038_vm11, %v1001_v41 }
 0x17c   : > { %1056 = vst.msk [vmem:[#allocation2 + $0x110] sm:$0xff] %vm1038_vm11, %v1019_v25 }
 0x17e   : > { %v1084_v3 = vpop.permute.xlu0 %1083  ;;  %v1576_v11 = vpop.f32.mrb[0].mxu0 }
 0x17f   : > { %v1102_v52 = vpop.permute.xlu1 %1101  ;;  %v1648_v28 = vpop.f32.mrb[0].mxu1  ;;  %1130 = vst.msk [vmem:[#allocation2 + $0x80] sm:$0xff] %vm1121_vm12, %v1084_v3  ;;  %v1577_v63 = vadd.f32 %v3511_v18, %v1576_v11 }
 0x180   : > { %1139 = vst.msk [vmem:[#allocation2 + $0x110] sm:$0xff] %vm1121_vm12, %v1102_v52  ;;  %v1649_v42 = vadd.f32 %v3511_v18, %v1648_v28  ;;  %v1578_v13 = vpop.f32.mrb[1].mxu0  ;;  %v1650_v39 = vpop.f32.mrb[1].mxu1 }
 0x181   : > { %vm1719_vm15 = vcmp.ge.f32.partialorder %v1577_v63, 0.0  ;;  %v1755_v17 = vmul.f32 0.1, %v1577_v63  ;;  %v1579_v53 = vpop.f32.mrb[2].mxu0  ;;  %v1651_v16 = vpop.f32.mrb[2].mxu1 }
 0x182   : > { %vm1737_vm0 = vcmp.ge.f32.partialorder %v1649_v42, 0.0  ;;  %v1773_v61 = vmul.f32 0.1, %v1649_v42  ;;  %v1580_v58 = vadd.f32 %v3511_v18, %v1579_v53  ;;  %v1652_v8 = vadd.f32 %v3511_v18, %v1651_v16  ;;  %v1581_v27 = vpop.f32.mrb[3].mxu0  ;;  %v1653_v5 = vpop.f32.mrb[3].mxu1 }
 0x183   : > { %v1791_v54 = vsel %vm1719_vm15, %v1577_v63, %v1755_v17  ;;  %v1261_v33 = vpop.permute.xlu1 %1260  ;;  %v1243_v2 = vpop.permute.xlu0 %1242 }
 0x184   : > { %v1809_v32 = vsel %vm1737_vm0, %v1649_v42, %v1773_v61  ;;  %1828 = vst.msk [vmem:[%s3521_s27] sm:$0xff] %vm1827_vm14, %v1791_v54  ;;  %vm1720_vm1 = vcmp.ge.f32.partialorder %v1580_v58, 0.0  ;;  %v1756_v20 = vmul.f32 0.1, %v1580_v58  ;;  %vm1738_vm2 = vcmp.ge.f32.partialorder %v1652_v8, 0.0 }
 0x185   : > { %1298 = vst.msk [vmem:[#allocation2 + $0x110] sm:$0xff] %vm1280_vm13, %v1261_v33  ;;  %1289 = vst.msk [vmem:[#allocation2 + $0x80] sm:$0xff] %vm1280_vm13, %v1243_v2  ;;  %v1774_v60 = vmul.f32 0.1, %v1652_v8 }
 0x186   : > { %1846 = vst.msk [vmem:[%s3521_s27 + $0x90] sm:$0xff] %vm1827_vm14, %v1809_v32  ;;  %v1792_v12 = vsel %vm1720_vm1, %v1580_v58, %v1756_v20 }
 0x187   : > { %1829 = vst.msk [vmem:[%s3521_s27 + $0x8] sm:$0xff] %vm1827_vm14, %v1792_v12  ;;  %v1810_v49 = vsel %vm1738_vm2, %v1652_v8, %v1774_v60 }
 0x188   : > { %1847 = vst.msk [vmem:[%s3521_s27 + $0x98] sm:$0xff] %vm1827_vm14, %v1810_v49 }
 0x18c   : > { %v1389_v19 = vld [vmem:[#allocation2 + $0x80] sm:$0xff]  ;;  %v1407_v57 = vld [vmem:[#allocation2 + $0x110] sm:$0xff] }
 0x18d   : > { %1639 = vmatmul.mubr.bf16.gmra.mrb[32].mxu0 %v1389_v19  ;;  %1711 = vmatmul.mubr.bf16.gmra.mrb[32].mxu1 %v1407_v57 }
 0x19a   : > { %v1584_v6 = vpop.f32.mrb[4].mxu0 }
 0x19b   : > { %v1585_v21 = vadd.f32 %v3511_v18, %v1584_v6  ;;  %v1656_v47 = vpop.f32.mrb[4].mxu1  ;;  %v1586_v56 = vpop.f32.mrb[5].mxu0 }
 0x19c   : > { %v1657_v37 = vadd.f32 %v3511_v18, %v1656_v47  ;;  %v1658_v38 = vpop.f32.mrb[5].mxu1  ;;  %v1587_v7 = vpop.f32.mrb[6].mxu0 }
 0x19d   : > { %vm1721_vm3 = vcmp.ge.f32.partialorder %v1585_v21, 0.0  ;;  %v1757_v24 = vmul.f32 0.1, %v1585_v21  ;;  %v1588_v59 = vadd.f32 %v3511_v18, %v1587_v7  ;;  %v1659_v36 = vpop.f32.mrb[6].mxu1  ;;  %v1589_v50 = vpop.f32.mrb[7].mxu0 }
 0x19e   : > { %vm1739_vm4 = vcmp.ge.f32.partialorder %v1657_v37, 0.0  ;;  %v1775_v62 = vmul.f32 0.1, %v1657_v37  ;;  %v1660_v34 = vadd.f32 %v3511_v18, %v1659_v36  ;;  %v1661_v26 = vpop.f32.mrb[7].mxu1 }
 0x19f   : > { %v1793_v31 = vsel %vm1721_vm3, %v1585_v21, %v1757_v24  ;;  %vm1722_vm5 = vcmp.ge.f32.partialorder %v1588_v59, 0.0  ;;  %v1758_v46 = vmul.f32 0.1, %v1588_v59 }
 0x1a0   : > { %1830 = vst.msk [vmem:[%s3521_s27 + $0x10] sm:$0xff] %vm1827_vm14, %v1793_v31  ;;  %v1811_v55 = vsel %vm1739_vm4, %v1657_v37, %v1775_v62  ;;  %vm1740_vm6 = vcmp.ge.f32.partialorder %v1660_v34, 0.0  ;;  %v1776_v10 = vmul.f32 0.1, %v1660_v34 }
 0x1a1   : > { %1848 = vst.msk [vmem:[%s3521_s27 + $0xa0] sm:$0xff] %vm1827_vm14, %v1811_v55  ;;  %v1794_v14 = vsel %vm1722_vm5, %v1588_v59, %v1758_v46 }
 0x1a2   : > { %1831 = vst.msk [vmem:[%s3521_s27 + $0x18] sm:$0xff] %vm1827_vm14, %v1794_v14  ;;  %v1812_v45 = vsel %vm1740_vm6, %v1660_v34, %v1776_v10 }
 0x1a3   : > { %1849 = vst.msk [vmem:[%s3521_s27 + $0xa8] sm:$0xff] %vm1827_vm14, %v1812_v45 }
 0x1b6   : > { %v1592_v30 = vpop.f32.mrb[8].mxu0 }
 0x1b7   : > { %v1593_v48 = vadd.f32 %v3511_v18, %v1592_v30  ;;  %v1664_v51 = vpop.f32.mrb[8].mxu1  ;;  %v1594_v43 = vpop.f32.mrb[9].mxu0 }
 0x1b8   : > { %v1665_v15 = vadd.f32 %v3511_v18, %v1664_v51  ;;  %v1666_v9 = vpop.f32.mrb[9].mxu1  ;;  %v1595_v35 = vpop.f32.mrb[10].mxu0 }
 0x1b9   : > { %vm1723_vm7 = vcmp.ge.f32.partialorder %v1593_v48, 0.0  ;;  %v1759_v0 = vmul.f32 0.1, %v1593_v48  ;;  %v1596_v4 = vadd.f32 %v3511_v18, %v1595_v35  ;;  %v1667_v29 = vpop.f32.mrb[10].mxu1  ;;  %v1597_v44 = vpop.f32.mrb[11].mxu0 }
 0x1ba   : > { %vm1741_vm8 = vcmp.ge.f32.partialorder %v1665_v15, 0.0  ;;  %v1777_v22 = vmul.f32 0.1, %v1665_v15  ;;  %v1668_v23 = vadd.f32 %v3511_v18, %v1667_v29  ;;  %v1669_v1 = vpop.f32.mrb[11].mxu1 }
 0x1bb   : > { %v1795_v40 = vsel %vm1723_vm7, %v1593_v48, %v1759_v0  ;;  %vm1724_vm9 = vcmp.ge.f32.partialorder %v1596_v4, 0.0  ;;  %v1760_v41 = vmul.f32 0.1, %v1596_v4 }
 0x1bc   : > { %1832 = vst.msk [vmem:[%s3521_s27 + $0x20] sm:$0xff] %vm1827_vm14, %v1795_v40  ;;  %v1813_v25 = vsel %vm1741_vm8, %v1665_v15, %v1777_v22  ;;  %vm1742_vm10 = vcmp.ge.f32.partialorder %v1668_v23, 0.0  ;;  %v1778_v3 = vmul.f32 0.1, %v1668_v23 }
 0x1bd   : > { %1850 = vst.msk [vmem:[%s3521_s27 + $0xb0] sm:$0xff] %vm1827_vm14, %v1813_v25  ;;  %v1796_v11 = vsel %vm1724_vm9, %v1596_v4, %v1760_v41 }
 0x1be   : > { %1833 = vst.msk [vmem:[%s3521_s27 + $0x28] sm:$0xff] %vm1827_vm14, %v1796_v11  ;;  %v1814_v52 = vsel %vm1742_vm10, %v1668_v23, %v1778_v3 }
 0x1bf   : > { %1851 = vst.msk [vmem:[%s3521_s27 + $0xb8] sm:$0xff] %vm1827_vm14, %v1814_v52 }
 0x1d2   : > { %v1600_v28 = vpop.f32.mrb[12].mxu0 }
 0x1d3   : > { %v1601_v63 = vadd.f32 %v3511_v18, %v1600_v28  ;;  %v1672_v42 = vpop.f32.mrb[12].mxu1  ;;  %v1602_v13 = vpop.f32.mrb[13].mxu0 }
 0x1d4   : > { %v1673_v39 = vadd.f32 %v3511_v18, %v1672_v42  ;;  %v1674_v17 = vpop.f32.mrb[13].mxu1  ;;  %v1603_v53 = vpop.f32.mrb[14].mxu0 }
 0x1d5   : > { %vm1725_vm11 = vcmp.ge.f32.partialorder %v1601_v63, 0.0  ;;  %v1761_v16 = vmul.f32 0.1, %v1601_v63  ;;  %v1604_v61 = vadd.f32 %v3511_v18, %v1603_v53  ;;  %v1675_v58 = vpop.f32.mrb[14].mxu1  ;;  %v1605_v8 = vpop.f32.mrb[15].mxu0 }
 0x1d6   : > { %vm1743_vm12 = vcmp.ge.f32.partialorder %v1673_v39, 0.0  ;;  %v1779_v27 = vmul.f32 0.1, %v1673_v39  ;;  %v1676_v5 = vadd.f32 %v3511_v18, %v1675_v58  ;;  %v1677_v54 = vpop.f32.mrb[15].mxu1 }
 0x1d7   : > { %v1797_v33 = vsel %vm1725_vm11, %v1601_v63, %v1761_v16  ;;  %vm1726_vm13 = vcmp.ge.f32.partialorder %v1604_v61, 0.0  ;;  %v1762_v2 = vmul.f32 0.1, %v1604_v61 }
 0x1d8   : > { %1834 = vst.msk [vmem:[%s3521_s27 + $0x30] sm:$0xff] %vm1827_vm14, %v1797_v33  ;;  %v1815_v32 = vsel %vm1743_vm12, %v1673_v39, %v1779_v27  ;;  %vm1744_vm15 = vcmp.ge.f32.partialorder %v1676_v5, 0.0  ;;  %v1780_v20 = vmul.f32 0.1, %v1676_v5 }
 0x1d9   : > { %1852 = vst.msk [vmem:[%s3521_s27 + $0xc0] sm:$0xff] %vm1827_vm14, %v1815_v32  ;;  %v1798_v60 = vsel %vm1726_vm13, %v1604_v61, %v1762_v2 }
 0x1da   : > { %1835 = vst.msk [vmem:[%s3521_s27 + $0x38] sm:$0xff] %vm1827_vm14, %v1798_v60  ;;  %v1816_v12 = vsel %vm1744_vm15, %v1676_v5, %v1780_v20 }
 0x1db   : > { %1853 = vst.msk [vmem:[%s3521_s27 + $0xc8] sm:$0xff] %vm1827_vm14, %v1816_v12 }
 0x1ee   : > { %v1608_v49 = vpop.f32.mrb[16].mxu0 }
 0x1ef   : > { %v1609_v19 = vadd.f32 %v3511_v18, %v1608_v49  ;;  %v1680_v57 = vpop.f32.mrb[16].mxu1  ;;  %v1610_v6 = vpop.f32.mrb[17].mxu0 }
 0x1f0   : > { %v1681_v21 = vadd.f32 %v3511_v18, %v1680_v57  ;;  %v1682_v47 = vpop.f32.mrb[17].mxu1  ;;  %v1611_v56 = vpop.f32.mrb[18].mxu0 }
 0x1f1   : > { %vm1727_vm0 = vcmp.ge.f32.partialorder %v1609_v19, 0.0  ;;  %v1763_v37 = vmul.f32 0.1, %v1609_v19  ;;  %v1612_v38 = vadd.f32 %v3511_v18, %v1611_v56  ;;  %v1683_v7 = vpop.f32.mrb[18].mxu1  ;;  %v1613_v24 = vpop.f32.mrb[19].mxu0 }
 0x1f2   : > { %vm1745_vm1 = vcmp.ge.f32.partialorder %v1681_v21, 0.0  ;;  %v1781_v59 = vmul.f32 0.1, %v1681_v21  ;;  %v1684_v36 = vadd.f32 %v3511_v18, %v1683_v7  ;;  %v1685_v50 = vpop.f32.mrb[19].mxu1 }
 0x1f3   : > { %v1799_v62 = vsel %vm1727_vm0, %v1609_v19, %v1763_v37  ;;  %vm1728_vm2 = vcmp.ge.f32.partialorder %v1612_v38, 0.0  ;;  %v1764_v34 = vmul.f32 0.1, %v1612_v38 }
 0x1f4   : > { %1836 = vst.msk [vmem:[%s3521_s27 + $0x40] sm:$0xff] %vm1827_vm14, %v1799_v62  ;;  %v1817_v26 = vsel %vm1745_vm1, %v1681_v21, %v1781_v59  ;;  %vm1746_vm3 = vcmp.ge.f32.partialorder %v1684_v36, 0.0  ;;  %v1782_v31 = vmul.f32 0.1, %v1684_v36 }
 0x1f5   : > { %1854 = vst.msk [vmem:[%s3521_s27 + $0xd0] sm:$0xff] %vm1827_vm14, %v1817_v26  ;;  %v1800_v46 = vsel %vm1728_vm2, %v1612_v38, %v1764_v34 }
 0x1f6   : > { %1837 = vst.msk [vmem:[%s3521_s27 + $0x48] sm:$0xff] %vm1827_vm14, %v1800_v46  ;;  %v1818_v55 = vsel %vm1746_vm3, %v1684_v36, %v1782_v31 }
 0x1f7   : > { %1855 = vst.msk [vmem:[%s3521_s27 + $0xd8] sm:$0xff] %vm1827_vm14, %v1818_v55 }
 0x20a   : > { %v1616_v10 = vpop.f32.mrb[20].mxu0 }
 0x20b   : > { %v1617_v14 = vadd.f32 %v3511_v18, %v1616_v10  ;;  %v1688_v45 = vpop.f32.mrb[20].mxu1  ;;  %v1618_v30 = vpop.f32.mrb[21].mxu0 }
 0x20c   : > { %v1689_v48 = vadd.f32 %v3511_v18, %v1688_v45  ;;  %v1690_v51 = vpop.f32.mrb[21].mxu1  ;;  %v1619_v43 = vpop.f32.mrb[22].mxu0 }
 0x20d   : > { %vm1729_vm4 = vcmp.ge.f32.partialorder %v1617_v14, 0.0  ;;  %v1765_v15 = vmul.f32 0.1, %v1617_v14  ;;  %v1620_v9 = vadd.f32 %v3511_v18, %v1619_v43  ;;  %v1691_v35 = vpop.f32.mrb[22].mxu1  ;;  %v1621_v0 = vpop.f32.mrb[23].mxu0 }
 0x20e   : > { %vm1747_vm5 = vcmp.ge.f32.partialorder %v1689_v48, 0.0  ;;  %v1783_v4 = vmul.f32 0.1, %v1689_v48  ;;  %v1692_v29 = vadd.f32 %v3511_v18, %v1691_v35  ;;  %v1693_v44 = vpop.f32.mrb[23].mxu1 }
 0x20f   : > { %v1801_v22 = vsel %vm1729_vm4, %v1617_v14, %v1765_v15  ;;  %vm1730_vm6 = vcmp.ge.f32.partialorder %v1620_v9, 0.0  ;;  %v1766_v23 = vmul.f32 0.1, %v1620_v9 }
 0x210   : > { %1838 = vst.msk [vmem:[%s3521_s27 + $0x50] sm:$0xff] %vm1827_vm14, %v1801_v22  ;;  %v1819_v1 = vsel %vm1747_vm5, %v1689_v48, %v1783_v4  ;;  %vm1748_vm7 = vcmp.ge.f32.partialorder %v1692_v29, 0.0  ;;  %v1784_v40 = vmul.f32 0.1, %v1692_v29 }
 0x211   : > { %1856 = vst.msk [vmem:[%s3521_s27 + $0xe0] sm:$0xff] %vm1827_vm14, %v1819_v1  ;;  %v1802_v41 = vsel %vm1730_vm6, %v1620_v9, %v1766_v23 }
 0x212   : > { %1839 = vst.msk [vmem:[%s3521_s27 + $0x58] sm:$0xff] %vm1827_vm14, %v1802_v41  ;;  %v1820_v25 = vsel %vm1748_vm7, %v1692_v29, %v1784_v40 }
 0x213   : > { %1857 = vst.msk [vmem:[%s3521_s27 + $0xe8] sm:$0xff] %vm1827_vm14, %v1820_v25 }
 0x226   : > { %v1624_v3 = vpop.f32.mrb[24].mxu0 }
 0x227   : > { %v1625_v11 = vadd.f32 %v3511_v18, %v1624_v3  ;;  %v1696_v52 = vpop.f32.mrb[24].mxu1  ;;  %v1626_v28 = vpop.f32.mrb[25].mxu0 }
 0x228   : > { %v1697_v63 = vadd.f32 %v3511_v18, %v1696_v52  ;;  %v1698_v42 = vpop.f32.mrb[25].mxu1  ;;  %v1627_v13 = vpop.f32.mrb[26].mxu0 }
 0x229   : > { %vm1731_vm8 = vcmp.ge.f32.partialorder %v1625_v11, 0.0  ;;  %v1767_v39 = vmul.f32 0.1, %v1625_v11  ;;  %v1628_v17 = vadd.f32 %v3511_v18, %v1627_v13  ;;  %v1699_v53 = vpop.f32.mrb[26].mxu1  ;;  %v1629_v16 = vpop.f32.mrb[27].mxu0 }
 0x22a   : > { %vm1749_vm9 = vcmp.ge.f32.partialorder %v1697_v63, 0.0  ;;  %v1785_v61 = vmul.f32 0.1, %v1697_v63  ;;  %v1700_v58 = vadd.f32 %v3511_v18, %v1699_v53  ;;  %v1701_v8 = vpop.f32.mrb[27].mxu1 }
 0x22b   : > { %v1803_v27 = vsel %vm1731_vm8, %v1625_v11, %v1767_v39  ;;  %vm1732_vm10 = vcmp.ge.f32.partialorder %v1628_v17, 0.0  ;;  %v1768_v5 = vmul.f32 0.1, %v1628_v17 }
 0x22c   : > { %1840 = vst.msk [vmem:[%s3521_s27 + $0x60] sm:$0xff] %vm1827_vm14, %v1803_v27  ;;  %v1821_v54 = vsel %vm1749_vm9, %v1697_v63, %v1785_v61  ;;  %vm1750_vm11 = vcmp.ge.f32.partialorder %v1700_v58, 0.0  ;;  %v1786_v33 = vmul.f32 0.1, %v1700_v58 }
 0x22d   : > { %1858 = vst.msk [vmem:[%s3521_s27 + $0xf0] sm:$0xff] %vm1827_vm14, %v1821_v54  ;;  %v1804_v2 = vsel %vm1732_vm10, %v1628_v17, %v1768_v5 }
 0x22e   : > { %1841 = vst.msk [vmem:[%s3521_s27 + $0x68] sm:$0xff] %vm1827_vm14, %v1804_v2  ;;  %v1822_v32 = vsel %vm1750_vm11, %v1700_v58, %v1786_v33 }
 0x22f   : > { %1859 = vst.msk [vmem:[%s3521_s27 + $0xf8] sm:$0xff] %vm1827_vm14, %v1822_v32 }
 0x242   : > { %v1632_v20 = vpop.f32.mrb[28].mxu0 }
 0x243   : > { %v1633_v60 = vadd.f32 %v3511_v18, %v1632_v20  ;;  %v1704_v12 = vpop.f32.mrb[28].mxu1  ;;  %v1634_v49 = vpop.f32.mrb[29].mxu0 }
 0x244   : > { %v1705_v19 = vadd.f32 %v3511_v18, %v1704_v12  ;;  %v1706_v57 = vpop.f32.mrb[29].mxu1  ;;  %v1635_v6 = vpop.f32.mrb[30].mxu0 }
 0x245   : > { %vm1733_vm12 = vcmp.ge.f32.partialorder %v1633_v60, 0.0  ;;  %v1769_v21 = vmul.f32 0.1, %v1633_v60  ;;  %v1636_v47 = vadd.f32 %v3511_v18, %v1635_v6  ;;  %v1707_v56 = vpop.f32.mrb[30].mxu1  ;;  %v1637_v37 = vpop.f32.mrb[31].mxu0 }
 0x246   : > { %vm1751_vm13 = vcmp.ge.f32.partialorder %v1705_v19, 0.0  ;;  %v1787_v38 = vmul.f32 0.1, %v1705_v19  ;;  %v1708_v7 = vadd.f32 %v3511_v18, %v1707_v56  ;;  %v1709_v24 = vpop.f32.mrb[31].mxu1 }
 0x247   : > { %v1805_v59 = vsel %vm1733_vm12, %v1633_v60, %v1769_v21  ;;  %vm1734_vm15 = vcmp.ge.f32.partialorder %v1636_v47, 0.0  ;;  %v1770_v36 = vmul.f32 0.1, %v1636_v47 }
 0x248   : > { %1842 = vst.msk [vmem:[%s3521_s27 + $0x70] sm:$0xff] %vm1827_vm14, %v1805_v59  ;;  %v1823_v50 = vsel %vm1751_vm13, %v1705_v19, %v1787_v38  ;;  %vm1752_vm0 = vcmp.ge.f32.partialorder %v1708_v7, 0.0  ;;  %v1788_v62 = vmul.f32 0.1, %v1708_v7 }
 0x249   : > { %1860 = vst.msk [vmem:[%s3521_s27 + $0x100] sm:$0xff] %vm1827_vm14, %v1823_v50  ;;  %v1806_v34 = vsel %vm1734_vm15, %v1636_v47, %v1770_v36 }
 0x24a   : > { %1843 = vst.msk [vmem:[%s3521_s27 + $0x78] sm:$0xff] %vm1827_vm14, %v1806_v34  ;;  %v1824_v26 = vsel %vm1752_vm0, %v1708_v7, %v1788_v62 }
 0x24b   : > { %1861 = vst.msk [vmem:[%s3521_s27 + $0x108] sm:$0xff] %vm1827_vm14, %v1824_v26 }
 0x260   : > { %v1640_v31 = vpop.f32.mrb[32].mxu0  ;;  %v1712_v46 = vpop.f32.mrb[32].mxu1 }
 0x261   : > { %v1641_v55 = vadd.f32 %v3511_v18, %v1640_v31  ;;  %v1713_v10 = vadd.f32 %v3511_v18, %v1712_v46  ;;  %v1642_v14 = vpop.f32.mrb[33].mxu0  ;;  %v1714_v45 = vpop.f32.mrb[33].mxu1 }
 0x262   : > { %v1643_v30 = vpop.f32.mrb[34].mxu0  ;;  %v1715_v48 = vpop.f32.mrb[34].mxu1 }
 0x263   : > { %vm1735_vm1 = vcmp.ge.f32.partialorder %v1641_v55, 0.0  ;;  %v1771_v51 = vmul.f32 0.1, %v1641_v55  ;;  %vm1753_vm2 = vcmp.ge.f32.partialorder %v1713_v10, 0.0  ;;  %v1789_v43 = vmul.f32 0.1, %v1713_v10 }
 0x264   : > { %v1644_v15 = vadd.f32 %v3511_v18, %v1643_v30  ;;  %v1716_v9 = vadd.f32 %v3511_v18, %v1715_v48  ;;  %v1645_v35 = vpop.f32.mrb[35].mxu0  ;;  %v1717_v0 = vpop.f32.mrb[35].mxu1 }
 0x265   : > { %v1807_v4 = vsel %vm1735_vm1, %v1641_v55, %v1771_v51  ;;  %v1825_v29 = vsel %vm1753_vm2, %v1713_v10, %v1789_v43 }
 0x266   : > { %1844 = vst.msk [vmem:[%s3521_s27 + $0x80] sm:$0xff] %vm1827_vm14, %v1807_v4  ;;  %1862 = vst.msk [vmem:[%s3521_s27 + $0x110] sm:$0xff] %vm1827_vm14, %v1825_v29  ;;  %vm1736_vm3 = vcmp.ge.f32.partialorder %v1644_v15, 0.0  ;;  %v1772_v44 = vmul.f32 0.1, %v1644_v15  ;;  %vm1754_vm4 = vcmp.ge.f32.partialorder %v1716_v9, 0.0 }
 0x267   : > { %v1790_v22 = vmul.f32 0.1, %v1716_v9 }
 0x268   : > { %v1808_v23 = vsel %vm1736_vm3, %v1644_v15, %v1772_v44 }
 0x269   : > { %v1826_v1 = vsel %vm1754_vm4, %v1716_v9, %v1790_v22  ;;  %1845 = vst.msk [vmem:[%s3521_s27 + $0x88] sm:$0xff] %vm1827_vm14, %v1808_v23 }
 0x26a   : > { %1863 = vst.msk [vmem:[%s3521_s27 + $0x118] sm:$0xff] %vm1827_vm14, %v1826_v1 }
 0x26b PF: > { %s13_s14 = sadd.s32 1, %s2111_s14   ;;  %s3729_s12 = smov %s2107_s13 }
 0x26c   : > { %p10_p5 = scmp.ge.s32.totalorder %s13_s14, 4   ;;  %s3730_s13 = smov %s3732_s15 }
 0x26e   :  { %12 = sbr.rel (!%p10_p5) target bundleno = 2 (0x2), region = 63 }

</bundles_post_ra>
